<compile_context>
chip_gen: v5e
topology: v5e:2x2
jax: 0.10.0
libtpu: 0.0.40
codegen_flags: <defaults>
</compile_context>

<pallas_src>
import functools

import numpy as np
import jax
import jax.numpy as jnp
from jax.experimental import pallas as pl
from jax.experimental.pallas import tpu as pltpu


# --------------------------------------------------------------------------- kernel
def cnn_policy_kernel(x_ref, m1_ref, b1_ref, m2_ref, b2_ref, pool_ref,
                      fw1_ref, fb1_ref, fw2_ref, fb2_ref, pw_ref, pb_ref,
                      out_ref, *, H, W):
    R = x_ref.shape[0]            # = bt * H rows (r = b*H + h)
    bt = R // H
    C2 = pool_ref.shape[1]

    # ---- one-hot slab, lane layout c*W + w :  S1[r, c*W + w] = (board[r, w] == c) ----
    rows = x_ref[...]                                                    # (R, W) int32
    s1 = jnp.concatenate(
        [(rows == c).astype(jnp.float32) for c in range(3)], axis=-1)    # (R, 3W)

    # ---- validity masks for +/-1 row shifts (zero padding at image top/bottom) ----
    h_idx = jax.lax.broadcasted_iota(jnp.int32, (bt, H, 1), 1).reshape(R, 1)
    valid_up = (h_idx > 0).astype(jnp.float32)        # rows allowed to read row r-1
    valid_dn = (h_idx < H - 1).astype(jnp.float32)    # rows allowed to read row r+1

    def shift_rows(s, d):
        """T[r, :] = s[r + d, :] if row r+d lies inside the same image, else 0."""
        if d == 0:
            return s
        z = jnp.zeros((1, s.shape[1]), s.dtype)
        if d > 0:
            return jnp.concatenate([s[1:, :], z], axis=0) * valid_dn
        return jnp.concatenate([z, s[:-1, :]], axis=0) * valid_up

    def conv3x3(s, m_ref, bias_ref):
        # 3x3 "same" conv: dy = 0,1,2 <-> source row r-1, r, r+1.  The dx taps,
        # the width zero-padding and the channel mixing are all inside the
        # block-banded matrices m_ref[dy]  ->  exactly 3 MXU matmuls per conv.
        acc = jnp.dot(shift_rows(s, -1), m_ref[0], preferred_element_type=jnp.float32)
        acc = acc + jnp.dot(s, m_ref[1], preferred_element_type=jnp.float32)
        acc = acc + jnp.dot(shift_rows(s, 1), m_ref[2], preferred_element_type=jnp.float32)
        return jnp.maximum(acc + bias_ref[...], 0.0)

    h1 = conv3x3(s1, m1_ref, b1_ref)          # (R, W*C1)  lanes = w*C1 + c
    h2 = conv3x3(h1, m2_ref, b2_ref)          # (R, W*C2)  lanes = w*C2 + c

    # ---- AdaptiveAvgPool2d((1,1)): w-mean via MXU constant, tiny 8-row h-sum ----
    pooled = jnp.dot(h2, pool_ref[...], preferred_element_type=jnp.float32)  # (R, C2), / (H*W)
    feat = jnp.sum(pooled.reshape(bt, H, C2), axis=1)                        # (bt, C2)

    # ---- fc head: Linear -> ReLU -> Linear -> ReLU -> p_linear ----
    z1 = jnp.maximum(
        jnp.dot(feat, fw1_ref[...], preferred_element_type=jnp.float32) + fb1_ref[...], 0.0)
    z2 = jnp.maximum(
        jnp.dot(z1, fw2_ref[...], preferred_element_type=jnp.float32) + fb2_ref[...], 0.0)
    logits = (jnp.dot(z2, pw_ref[...], preferred_element_type=jnp.float32)
              + pb_ref[...])                                                  # (bt, n_pad)

    # ---- softmax over actions (padded columns carry bias -1e30 -> prob exactly 0) ----
    m = jnp.max(logits, axis=-1, keepdims=True)
    e = jnp.exp(logits - m)
    out_ref[...] = e / jnp.sum(e, axis=-1, keepdims=True)


# --------------------------------------------------------------------------- wrapper
def prepare_kernel_params(params, board_size, n_actions):
    """One-time host-side weight preparation (band matrices, tiled biases, padding)."""
    (w1, b1, w2, b2, fw1, fb1, fw2, fb2, pw, pb) = [np.asarray(p, np.float32) for p in params]
    H = W = board_size
    c_in, C1 = w1.shape[1], w1.shape[2]
    C2 = w2.shape[2]
    assert c_in == 3

    def band(wf, Cin, Cout, in_lane):
        # wf: (9, Cin, Cout), tap index dy*3+dx.  Output lane = w*Cout + co.
        M = np.zeros((3, Cin * W, W * Cout), np.float32)
        for dy in range(3):
            for w in range(W):
                for dx in range(3):
                    wi = w + dx - 1
                    if 0 <= wi < W:
                        for ci in range(Cin):
                            M[dy, in_lane(ci, wi), w * Cout:(w + 1) * Cout] = wf[dy * 3 + dx, ci]
        return M

    m1 = band(w1, 3, C1, lambda ci, wi: ci * W + wi)    # input lanes c*W + w (one-hot slab)
    m2 = band(w2, C1, C2, lambda ci, wi: wi * C1 + ci)  # input lanes w*C1 + c (conv1 output slab)

    b1t = np.tile(b1.reshape(1, C1), (1, W))            # (1, W*C1)
    b2t = np.tile(b2.reshape(1, C2), (1, W))            # (1, W*C2)
    pool = np.tile(np.eye(C2, dtype=np.float32), (W, 1)) / float(H * W)   # (W*C2, C2)

    # Lane-pad the policy head to a multiple of 128: weight 0, bias -1e30 => prob 0.
    n_pad = max(128, -(-n_actions // 128) * 128)
    pw_p = np.zeros((pw.shape[0], n_pad), np.float32)
    pw_p[:, :n_actions] = pw
    pb_p = np.full((1, n_pad), -1e30, np.float32)
    pb_p[:, :n_actions] = pb.reshape(1, -1)

    dev = jnp.asarray
    return dict(board_size=board_size, n_actions=n_actions,
                m1=dev(m1), b1=dev(b1t), m2=dev(m2), b2=dev(b2t), pool=dev(pool),
                fw1=dev(fw1), fb1=dev(fb1.reshape(1, -1)),
                fw2=dev(fw2), fb2=dev(fb2.reshape(1, -1)),
                pw=dev(pw_p), pb=dev(pb_p))


def _pick_batch_tile(B, requested):
    if B <= 8:
        return B
    bt = max(8, (min(requested, B) // 8) * 8)
    # Prefer >= 4 grid steps when the batch allows it (v7x: 2 TCs + pipeline depth).
    while bt > 32 and (B + bt - 1) // bt < 4:
        bt = max(32, ((bt // 2) // 8) * 8)
    return bt


def cnn_policy_forward(x_int, prep, *, batch_tile=128):
    """x_int: (B, board, board) integer board with values in {0, 1, 2}."""
    H = W = prep["board_size"]
    n_actions = prep["n_actions"]
    n_pad = prep["pw"].shape[1]
    B = x_int.shape[0]
    assert x_int.shape[1] == H and x_int.shape[2] == W

    bt = _pick_batch_tile(B, batch_tile)
    b_pad = ((B + bt - 1) // bt) * bt

    # Board as a 2-D (B*H, W) row slab — exactly the layout the conv consumes.
    xf = x_int.reshape(B * H, W).astype(jnp.int32)
    if b_pad != B:
        xf = jnp.pad(xf, ((0, (b_pad - B) * H), (0, 0)))

    C1 = prep["b1"].shape[1] // W
    C2 = prep["b2"].shape[1] // W
    h1d = prep["fw1"].shape[1]
    h2d = prep["fw2"].shape[1]
    R_total = b_pad * H
    flops = int(3 * 2 * R_total * (3 * W) * (W * C1)
                + 3 * 2 * R_total * (W * C1) * (W * C2)
                + 2 * R_total * (W * C2) * C2
                + 2 * b_pad * (C2 * h1d + h1d * h2d + h2d * n_pad))
    bytes_accessed = int(4 * (b_pad * H * W + b_pad * n_pad)
                         + sum(4 * int(np.prod(prep[k].shape)) for k in
                               ("m1", "b1", "m2", "b2", "pool",
                                "fw1", "fb1", "fw2", "fb2", "pw", "pb")))
    cost = pl.CostEstimate(flops=flops, transcendentals=int(b_pad * n_pad),
                           bytes_accessed=bytes_accessed)

    wspec = pl.BlockSpec(memory_space=pltpu.MemorySpace.VMEM)   # weights stay resident
    grid_spec = pltpu.PrefetchScalarGridSpec(
        num_scalar_prefetch=0,
        grid=(b_pad // bt,),
        in_specs=[pl.BlockSpec((bt * H, W), lambda i: (i, 0))] + [wspec] * 11,
        out_specs=pl.BlockSpec((bt, n_pad), lambda i: (i, 0)),
    )
    kernel = functools.partial(cnn_policy_kernel, H=H, W=W)
    probs = pl.pallas_call(
        kernel,
        out_shape=jax.ShapeDtypeStruct((b_pad, n_pad), jnp.float32),
        grid_spec=grid_spec,
        compiler_params=pltpu.CompilerParams(
            dimension_semantics=("parallel",),
            vmem_limit_bytes=48 * 1024 * 1024,
        ),
        cost_estimate=cost,
    )(xf, prep["m1"], prep["b1"], prep["m2"], prep["b2"], prep["pool"],
      prep["fw1"], prep["fb1"], prep["fw2"], prep["fb2"], prep["pw"], prep["pb"])
    return probs[:B, :n_actions]


# --------------------------------------------------------------------------- reference / init
def reference_forward(x_int, params):
    """Pure-JAX reference of the PyTorch module (for correctness checking)."""
    (w1, b1, w2, b2, fw1, fb1, fw2, fb2, pw, pb) = params
    x = jax.nn.one_hot(x_int, 3, dtype=jnp.float32)                      # NHWC, channel = class

    def conv(t, wf, b):
        k = wf.reshape(3, 3, wf.shape[1], wf.shape[2])                   # HWIO, tap = dy*3+dx
        y = jax.lax.conv_general_dilated(t, k, window_strides=(1, 1), padding="SAME",
                                         dimension_numbers=("NHWC", "HWIO", "NHWC"))
        return jax.nn.relu(y + b.reshape(1, 1, 1, -1))

    h = conv(conv(x, w1, b1), w2, b2)
    feat = jnp.mean(h, axis=(1, 2))                                      # AdaptiveAvgPool2d((1,1))
    z = jax.nn.relu(feat @ fw1 + fb1)
    z = jax.nn.relu(z @ fw2 + fb2)
    return jax.nn.softmax(z @ pw + pb, axis=-1)                          # nn.Softmax -> dim=1


def init_params(key, n_actions, hidden_dims=(32, 32)):
    """Synthetic parameters (PyTorch-like fan-in uniform bounds).

    Conv weights: (9, Cin, Cout) with tap index dy*3+dx; linear weights: (in, out).
    """
    h1, h2 = hidden_dims
    ks = jax.random.split(key, 10)

    def u(k, shape, fan_in):
        bound = float(1.0 / (fan_in ** 0.5))
        return jax.random.uniform(k, shape, jnp.float32, -bound, bound)

    w1 = u(ks[0], (9, 3, 32), 3 * 9)
    b1 = u(ks[1], (1, 32), 3 * 9)
    w2 = u(ks[2], (9, 32, 64), 32 * 9)
    b2 = u(ks[3], (1, 64), 32 * 9)
    fw1 = u(ks[4], (64, h1), 64)
    fb1 = u(ks[5], (1, h1), 64)
    fw2 = u(ks[6], (h1, h2), h1)
    fb2 = u(ks[7], (1, h2), h1)
    pw = u(ks[8], (h2, n_actions), h2)
    pb = u(ks[9], (1, n_actions), h2)
    return (w1, b1, w2, b2, fw1, fb1, fw2, fb2, pw, pb)


if __name__ == "__main__":
    board_size, n_actions, hidden_dims = 8, 10, (32, 32)
    params = init_params(jax.random.PRNGKey(42), n_actions, hidden_dims)
    prep = prepare_kernel_params(params, board_size, n_actions)

    base_key = jax.random.PRNGKey(0)
    # B=2 exercises the single-tile path; B=50 exercises the batch-tiled grid
    # (bt=32, 2 grid steps) plus batch padding.
    for B in (2, 50):
        x = jax.random.randint(jax.random.fold_in(base_key, B),
                               (B, board_size, board_size), 0, 3, dtype=jnp.int32)
        probs = jax.block_until_ready(cnn_policy_forward(x, prep))
        ref = jax.block_until_ready(reference_forward(x, params))

        assert probs.shape == (B, n_actions)
        assert bool(jnp.all(jnp.isfinite(probs)))
        assert bool(jnp.all(probs >= 0.0))
        assert bool(jnp.allclose(jnp.sum(probs, axis=-1), 1.0, atol=1e-5))
        assert bool(jnp.allclose(probs, ref, atol=1e-4, rtol=1e-3)), (
            "max abs diff vs reference: %e"
            % float(jnp.max(jnp.abs(probs - ref))))
    print("KERNEL_OK")
</pallas_src>

<mosaic_0001>
module attributes {stable_mosaic.version = 11 : i64} {
  func.func @cnn_policy_kernel(%arg0: i32, %arg1: memref<16x8xi32, #tpu.memory_space<vmem>>, %arg2: memref<3x24x256xf32, #tpu.memory_space<vmem>>, %arg3: memref<1x256xf32, #tpu.memory_space<vmem>>, %arg4: memref<3x256x512xf32, #tpu.memory_space<vmem>>, %arg5: memref<1x512xf32, #tpu.memory_space<vmem>>, %arg6: memref<512x64xf32, #tpu.memory_space<vmem>>, %arg7: memref<64x32xf32, #tpu.memory_space<vmem>>, %arg8: memref<1x32xf32, #tpu.memory_space<vmem>>, %arg9: memref<32x32xf32, #tpu.memory_space<vmem>>, %arg10: memref<1x32xf32, #tpu.memory_space<vmem>>, %arg11: memref<32x128xf32, #tpu.memory_space<vmem>>, %arg12: memref<1x128xf32, #tpu.memory_space<vmem>>, %arg13: memref<2x128xf32, #tpu.memory_space<vmem>>) attributes {dimension_semantics = [#tpu.dimension_semantics<parallel>], iteration_bounds = array<i64: 1>, scalar_prefetch = 0 : i64, scratch_operands = 0 : i64, tpu.core_type = #tpu.core_type<tc>, window_params = [{transform_indices = @transform_0, window_bounds = array<i64: 16, 8>}, {pipeline_mode = #tpu.pipeline_mode<synchronous>, transform_indices = @transform_1, window_bounds = array<i64: 3, 24, 256>}, {pipeline_mode = #tpu.pipeline_mode<synchronous>, transform_indices = @transform_2, window_bounds = array<i64: 1, 256>}, {pipeline_mode = #tpu.pipeline_mode<synchronous>, transform_indices = @transform_3, window_bounds = array<i64: 3, 256, 512>}, {pipeline_mode = #tpu.pipeline_mode<synchronous>, transform_indices = @transform_4, window_bounds = array<i64: 1, 512>}, {pipeline_mode = #tpu.pipeline_mode<synchronous>, transform_indices = @transform_5, window_bounds = array<i64: 512, 64>}, {pipeline_mode = #tpu.pipeline_mode<synchronous>, transform_indices = @transform_6, window_bounds = array<i64: 64, 32>}, {pipeline_mode = #tpu.pipeline_mode<synchronous>, transform_indices = @transform_7, window_bounds = array<i64: 1, 32>}, {pipeline_mode = #tpu.pipeline_mode<synchronous>, transform_indices = @transform_8, window_bounds = array<i64: 32, 32>}, {pipeline_mode = #tpu.pipeline_mode<synchronous>, transform_indices = @transform_9, window_bounds = array<i64: 1, 32>}, {pipeline_mode = #tpu.pipeline_mode<synchronous>, transform_indices = @transform_10, window_bounds = array<i64: 32, 128>}, {pipeline_mode = #tpu.pipeline_mode<synchronous>, transform_indices = @transform_11, window_bounds = array<i64: 1, 128>}, {transform_indices = @transform_12, window_bounds = array<i64: 2, 128>}]} {
    %c0 = arith.constant 0 : index
    %c0_0 = arith.constant 0 : index
    %0 = vector.load %arg1[%c0, %c0_0] : memref<16x8xi32, #tpu.memory_space<vmem>>, vector<16x8xi32>
    %c0_i32 = arith.constant 0 : i32
    %1 = vector.broadcast %c0_i32 : i32 to vector<16x8xi32>
    %2 = arith.cmpi eq, %0, %1 : vector<16x8xi32>
    %3 = arith.extui %2 : vector<16x8xi1> to vector<16x8xi32>
    %4 = arith.sitofp %3 : vector<16x8xi32> to vector<16x8xf32>
    %c1_i32 = arith.constant 1 : i32
    %5 = vector.broadcast %c1_i32 : i32 to vector<16x8xi32>
    %6 = arith.cmpi eq, %0, %5 : vector<16x8xi32>
    %7 = arith.extui %6 : vector<16x8xi1> to vector<16x8xi32>
    %8 = arith.sitofp %7 : vector<16x8xi32> to vector<16x8xf32>
    %c2_i32 = arith.constant 2 : i32
    %9 = vector.broadcast %c2_i32 : i32 to vector<16x8xi32>
    %10 = arith.cmpi eq, %0, %9 : vector<16x8xi32>
    %11 = arith.extui %10 : vector<16x8xi1> to vector<16x8xi32>
    %12 = arith.sitofp %11 : vector<16x8xi32> to vector<16x8xf32>
    %13 = tpu.concatenate %4, %8, %12 in 1 : vector<16x8xf32>, vector<16x8xf32>, vector<16x8xf32> -> vector<16x24xf32>
    %14 = tpu.iota {dimensions = array<i32: 1>} : vector<2x8x1xi32>
    %15 = vector.shape_cast %14 : vector<2x8x1xi32> to vector<16x1xi32>
    %c0_i32_1 = arith.constant 0 : i32
    %16 = vector.broadcast %c0_i32_1 : i32 to vector<16x1xi32>
    %17 = arith.cmpi sgt, %15, %16 : vector<16x1xi32>
    %18 = arith.extui %17 : vector<16x1xi1> to vector<16x1xi32>
    %19 = arith.sitofp %18 : vector<16x1xi32> to vector<16x1xf32>
    %c7_i32 = arith.constant 7 : i32
    %20 = vector.broadcast %c7_i32 : i32 to vector<16x1xi32>
    %21 = arith.cmpi slt, %15, %20 : vector<16x1xi32>
    %22 = arith.extui %21 : vector<16x1xi1> to vector<16x1xi32>
    %23 = arith.sitofp %22 : vector<16x1xi32> to vector<16x1xf32>
    %cst = arith.constant 0.000000e+00 : f32
    %24 = vector.broadcast %cst : f32 to vector<1x24xf32>
    %25 = vector.extract_strided_slice %13 {offsets = [0, 0], sizes = [15, 24], strides = [1, 1]} : vector<16x24xf32> to vector<15x24xf32>
    %26 = tpu.concatenate %24, %25 in 0 : vector<1x24xf32>, vector<15x24xf32> -> vector<16x24xf32>
    %27 = vector.broadcast %19 : vector<16x1xf32> to vector<16x24xf32>
    %28 = arith.mulf %26, %27 : vector<16x24xf32>
    %c0_2 = arith.constant 0 : index
    %c0_3 = arith.constant 0 : index
    %c0_4 = arith.constant 0 : index
    %29 = vector.load %arg2[%c0_2, %c0_3, %c0_4] : memref<3x24x256xf32, #tpu.memory_space<vmem>>, vector<1x24x256xf32>
    %30 = vector.shape_cast %29 : vector<1x24x256xf32> to vector<24x256xf32>
    %cst_5 = arith.constant dense<0.000000e+00> : vector<16x256xf32>
    %31 = tpu.matmul %28, %30, %cst_5 {dimension_numbers = #tpu.dot_dimension_numbers<[1], [0], [0], [1], [0, 0, 1, 1], [], []>} : vector<16x24xf32>, vector<24x256xf32>, vector<16x256xf32> -> vector<16x256xf32>
    %c1 = arith.constant 1 : index
    %c0_6 = arith.constant 0 : index
    %c0_7 = arith.constant 0 : index
    %32 = vector.load %arg2[%c1, %c0_6, %c0_7] : memref<3x24x256xf32, #tpu.memory_space<vmem>>, vector<1x24x256xf32>
    %33 = vector.shape_cast %32 : vector<1x24x256xf32> to vector<24x256xf32>
    %cst_8 = arith.constant dense<0.000000e+00> : vector<16x256xf32>
    %34 = tpu.matmul %13, %33, %cst_8 {dimension_numbers = #tpu.dot_dimension_numbers<[1], [0], [0], [1], [0, 0, 1, 1], [], []>} : vector<16x24xf32>, vector<24x256xf32>, vector<16x256xf32> -> vector<16x256xf32>
    %35 = arith.addf %31, %34 : vector<16x256xf32>
    %cst_9 = arith.constant 0.000000e+00 : f32
    %36 = vector.broadcast %cst_9 : f32 to vector<1x24xf32>
    %37 = vector.extract_strided_slice %13 {offsets = [1, 0], sizes = [15, 24], strides = [1, 1]} : vector<16x24xf32> to vector<15x24xf32>
    %38 = tpu.concatenate %37, %36 in 0 : vector<15x24xf32>, vector<1x24xf32> -> vector<16x24xf32>
    %39 = vector.broadcast %23 : vector<16x1xf32> to vector<16x24xf32>
    %40 = arith.mulf %38, %39 : vector<16x24xf32>
    %c2 = arith.constant 2 : index
    %c0_10 = arith.constant 0 : index
    %c0_11 = arith.constant 0 : index
    %41 = vector.load %arg2[%c2, %c0_10, %c0_11] : memref<3x24x256xf32, #tpu.memory_space<vmem>>, vector<1x24x256xf32>
    %42 = vector.shape_cast %41 : vector<1x24x256xf32> to vector<24x256xf32>
    %cst_12 = arith.constant dense<0.000000e+00> : vector<16x256xf32>
    %43 = tpu.matmul %40, %42, %cst_12 {dimension_numbers = #tpu.dot_dimension_numbers<[1], [0], [0], [1], [0, 0, 1, 1], [], []>} : vector<16x24xf32>, vector<24x256xf32>, vector<16x256xf32> -> vector<16x256xf32>
    %44 = arith.addf %35, %43 : vector<16x256xf32>
    %c0_13 = arith.constant 0 : index
    %c0_14 = arith.constant 0 : index
    %45 = vector.load %arg3[%c0_13, %c0_14] : memref<1x256xf32, #tpu.memory_space<vmem>>, vector<1x256xf32>
    %46 = vector.broadcast %45 : vector<1x256xf32> to vector<16x256xf32>
    %47 = arith.addf %44, %46 : vector<16x256xf32>
    %cst_15 = arith.constant 0.000000e+00 : f32
    %48 = vector.broadcast %cst_15 : f32 to vector<16x256xf32>
    %49 = arith.maximumf %47, %48 : vector<16x256xf32>
    %cst_16 = arith.constant 0.000000e+00 : f32
    %50 = vector.broadcast %cst_16 : f32 to vector<1x256xf32>
    %51 = vector.extract_strided_slice %49 {offsets = [0, 0], sizes = [15, 256], strides = [1, 1]} : vector<16x256xf32> to vector<15x256xf32>
    %52 = tpu.concatenate %50, %51 in 0 : vector<1x256xf32>, vector<15x256xf32> -> vector<16x256xf32>
    %53 = vector.broadcast %19 : vector<16x1xf32> to vector<16x256xf32>
    %54 = arith.mulf %52, %53 : vector<16x256xf32>
    %c0_17 = arith.constant 0 : index
    %c0_18 = arith.constant 0 : index
    %c0_19 = arith.constant 0 : index
    %55 = vector.load %arg4[%c0_17, %c0_18, %c0_19] : memref<3x256x512xf32, #tpu.memory_space<vmem>>, vector<1x256x512xf32>
    %56 = vector.shape_cast %55 : vector<1x256x512xf32> to vector<256x512xf32>
    %cst_20 = arith.constant dense<0.000000e+00> : vector<16x512xf32>
    %57 = tpu.matmul %54, %56, %cst_20 {dimension_numbers = #tpu.dot_dimension_numbers<[1], [0], [0], [1], [0, 0, 1, 1], [], []>} : vector<16x256xf32>, vector<256x512xf32>, vector<16x512xf32> -> vector<16x512xf32>
    %c1_21 = arith.constant 1 : index
    %c0_22 = arith.constant 0 : index
    %c0_23 = arith.constant 0 : index
    %58 = vector.load %arg4[%c1_21, %c0_22, %c0_23] : memref<3x256x512xf32, #tpu.memory_space<vmem>>, vector<1x256x512xf32>
    %59 = vector.shape_cast %58 : vector<1x256x512xf32> to vector<256x512xf32>
    %cst_24 = arith.constant dense<0.000000e+00> : vector<16x512xf32>
    %60 = tpu.matmul %49, %59, %cst_24 {dimension_numbers = #tpu.dot_dimension_numbers<[1], [0], [0], [1], [0, 0, 1, 1], [], []>} : vector<16x256xf32>, vector<256x512xf32>, vector<16x512xf32> -> vector<16x512xf32>
    %61 = arith.addf %57, %60 : vector<16x512xf32>
    %cst_25 = arith.constant 0.000000e+00 : f32
    %62 = vector.broadcast %cst_25 : f32 to vector<1x256xf32>
    %63 = vector.extract_strided_slice %49 {offsets = [1, 0], sizes = [15, 256], strides = [1, 1]} : vector<16x256xf32> to vector<15x256xf32>
    %64 = tpu.concatenate %63, %62 in 0 : vector<15x256xf32>, vector<1x256xf32> -> vector<16x256xf32>
    %65 = vector.broadcast %23 : vector<16x1xf32> to vector<16x256xf32>
    %66 = arith.mulf %64, %65 : vector<16x256xf32>
    %c2_26 = arith.constant 2 : index
    %c0_27 = arith.constant 0 : index
    %c0_28 = arith.constant 0 : index
    %67 = vector.load %arg4[%c2_26, %c0_27, %c0_28] : memref<3x256x512xf32, #tpu.memory_space<vmem>>, vector<1x256x512xf32>
    %68 = vector.shape_cast %67 : vector<1x256x512xf32> to vector<256x512xf32>
    %cst_29 = arith.constant dense<0.000000e+00> : vector<16x512xf32>
    %69 = tpu.matmul %66, %68, %cst_29 {dimension_numbers = #tpu.dot_dimension_numbers<[1], [0], [0], [1], [0, 0, 1, 1], [], []>} : vector<16x256xf32>, vector<256x512xf32>, vector<16x512xf32> -> vector<16x512xf32>
    %70 = arith.addf %61, %69 : vector<16x512xf32>
    %c0_30 = arith.constant 0 : index
    %c0_31 = arith.constant 0 : index
    %71 = vector.load %arg5[%c0_30, %c0_31] : memref<1x512xf32, #tpu.memory_space<vmem>>, vector<1x512xf32>
    %72 = vector.broadcast %71 : vector<1x512xf32> to vector<16x512xf32>
    %73 = arith.addf %70, %72 : vector<16x512xf32>
    %cst_32 = arith.constant 0.000000e+00 : f32
    %74 = vector.broadcast %cst_32 : f32 to vector<16x512xf32>
    %75 = arith.maximumf %73, %74 : vector<16x512xf32>
    %c0_33 = arith.constant 0 : index
    %c0_34 = arith.constant 0 : index
    %76 = vector.load %arg6[%c0_33, %c0_34] : memref<512x64xf32, #tpu.memory_space<vmem>>, vector<512x64xf32>
    %cst_35 = arith.constant dense<0.000000e+00> : vector<16x64xf32>
    %77 = tpu.matmul %75, %76, %cst_35 {dimension_numbers = #tpu.dot_dimension_numbers<[1], [0], [0], [1], [0, 0, 1, 1], [], []>} : vector<16x512xf32>, vector<512x64xf32>, vector<16x64xf32> -> vector<16x64xf32>
    %78 = vector.shape_cast %77 : vector<16x64xf32> to vector<2x8x64xf32>
    %cst_36 = arith.constant dense<0.000000e+00> : vector<2x64xf32>
    %79 = vector.multi_reduction <add>, %78, %cst_36 [1] : vector<2x8x64xf32> to vector<2x64xf32>
    %c0_37 = arith.constant 0 : index
    %c0_38 = arith.constant 0 : index
    %80 = vector.load %arg7[%c0_37, %c0_38] : memref<64x32xf32, #tpu.memory_space<vmem>>, vector<64x32xf32>
    %cst_39 = arith.constant dense<0.000000e+00> : vector<2x32xf32>
    %81 = tpu.matmul %79, %80, %cst_39 {dimension_numbers = #tpu.dot_dimension_numbers<[1], [0], [0], [1], [0, 0, 1, 1], [], []>} : vector<2x64xf32>, vector<64x32xf32>, vector<2x32xf32> -> vector<2x32xf32>
    %c0_40 = arith.constant 0 : index
    %c0_41 = arith.constant 0 : index
    %82 = vector.load %arg8[%c0_40, %c0_41] : memref<1x32xf32, #tpu.memory_space<vmem>>, vector<1x32xf32>
    %83 = vector.broadcast %82 : vector<1x32xf32> to vector<2x32xf32>
    %84 = arith.addf %81, %83 : vector<2x32xf32>
    %cst_42 = arith.constant 0.000000e+00 : f32
    %85 = vector.broadcast %cst_42 : f32 to vector<2x32xf32>
    %86 = arith.maximumf %84, %85 : vector<2x32xf32>
    %c0_43 = arith.constant 0 : index
    %c0_44 = arith.constant 0 : index
    %87 = vector.load %arg9[%c0_43, %c0_44] : memref<32x32xf32, #tpu.memory_space<vmem>>, vector<32x32xf32>
    %cst_45 = arith.constant dense<0.000000e+00> : vector<2x32xf32>
    %88 = tpu.matmul %86, %87, %cst_45 {dimension_numbers = #tpu.dot_dimension_numbers<[1], [0], [0], [1], [0, 0, 1, 1], [], []>} : vector<2x32xf32>, vector<32x32xf32>, vector<2x32xf32> -> vector<2x32xf32>
    %c0_46 = arith.constant 0 : index
    %c0_47 = arith.constant 0 : index
    %89 = vector.load %arg10[%c0_46, %c0_47] : memref<1x32xf32, #tpu.memory_space<vmem>>, vector<1x32xf32>
    %90 = vector.broadcast %89 : vector<1x32xf32> to vector<2x32xf32>
    %91 = arith.addf %88, %90 : vector<2x32xf32>
    %cst_48 = arith.constant 0.000000e+00 : f32
    %92 = vector.broadcast %cst_48 : f32 to vector<2x32xf32>
    %93 = arith.maximumf %91, %92 : vector<2x32xf32>
    %c0_49 = arith.constant 0 : index
    %c0_50 = arith.constant 0 : index
    %94 = vector.load %arg11[%c0_49, %c0_50] : memref<32x128xf32, #tpu.memory_space<vmem>>, vector<32x128xf32>
    %cst_51 = arith.constant dense<0.000000e+00> : vector<2x128xf32>
    %95 = tpu.matmul %93, %94, %cst_51 {dimension_numbers = #tpu.dot_dimension_numbers<[1], [0], [0], [1], [0, 0, 1, 1], [], []>} : vector<2x32xf32>, vector<32x128xf32>, vector<2x128xf32> -> vector<2x128xf32>
    %c0_52 = arith.constant 0 : index
    %c0_53 = arith.constant 0 : index
    %96 = vector.load %arg12[%c0_52, %c0_53] : memref<1x128xf32, #tpu.memory_space<vmem>>, vector<1x128xf32>
    %97 = vector.broadcast %96 : vector<1x128xf32> to vector<2x128xf32>
    %98 = arith.addf %95, %97 : vector<2x128xf32>
    %cst_54 = arith.constant dense<0xFF800000> : vector<2xf32>
    %99 = vector.multi_reduction <maximumf>, %98, %cst_54 [1] : vector<2x128xf32> to vector<2xf32>
    %100 = vector.shape_cast %99 : vector<2xf32> to vector<2x1xf32>
    %101 = vector.broadcast %100 : vector<2x1xf32> to vector<2x128xf32>
    %102 = arith.subf %98, %101 : vector<2x128xf32>
    %103 = math.exp %102 : vector<2x128xf32>
    %cst_55 = arith.constant dense<0.000000e+00> : vector<2xf32>
    %104 = vector.multi_reduction <add>, %103, %cst_55 [1] : vector<2x128xf32> to vector<2xf32>
    %105 = vector.shape_cast %104 : vector<2xf32> to vector<2x1xf32>
    %106 = vector.broadcast %105 : vector<2x1xf32> to vector<2x128xf32>
    %107 = arith.divf %103, %106 : vector<2x128xf32>
    %c0_56 = arith.constant 0 : index
    %c0_57 = arith.constant 0 : index
    %108 = vector.load %arg13[%c0_56, %c0_57] : memref<2x128xf32, #tpu.memory_space<vmem>>, vector<2x128xf32>
    tpu.vector_store %arg13[%c0_56, %c0_57], %107 {strides = array<i32>} : memref<2x128xf32, #tpu.memory_space<vmem>>, vector<2x128xf32>,
    return
  }
  func.func @transform_0(%arg0: i32) -> (i32, i32) {
    %c0_i32 = arith.constant 0 : i32
    %c0_i32_0 = arith.constant 0 : i32
    return %arg0, %c0_i32 : i32, i32
  }
  func.func @transform_1(%arg0: i32) -> (i32, i32, i32) {
    %c0_i32 = arith.constant 0 : i32
    %c0_i32_0 = arith.constant 0 : i32
    %c0_i32_1 = arith.constant 0 : i32
    %c0_i32_2 = arith.constant 0 : i32
    return %c0_i32, %c0_i32_0, %c0_i32_1 : i32, i32, i32
  }
  func.func @transform_2(%arg0: i32) -> (i32, i32) {
    %c0_i32 = arith.constant 0 : i32
    %c0_i32_0 = arith.constant 0 : i32
    %c0_i32_1 = arith.constant 0 : i32
    return %c0_i32, %c0_i32_0 : i32, i32
  }
  func.func @transform_3(%arg0: i32) -> (i32, i32, i32) {
    %c0_i32 = arith.constant 0 : i32
    %c0_i32_0 = arith.constant 0 : i32
    %c0_i32_1 = arith.constant 0 : i32
    %c0_i32_2 = arith.constant 0 : i32
    return %c0_i32, %c0_i32_0, %c0_i32_1 : i32, i32, i32
  }
  func.func @transform_4(%arg0: i32) -> (i32, i32) {
    %c0_i32 = arith.constant 0 : i32
    %c0_i32_0 = arith.constant 0 : i32
    %c0_i32_1 = arith.constant 0 : i32
    return %c0_i32, %c0_i32_0 : i32, i32
  }
  func.func @transform_5(%arg0: i32) -> (i32, i32) {
    %c0_i32 = arith.constant 0 : i32
    %c0_i32_0 = arith.constant 0 : i32
    %c0_i32_1 = arith.constant 0 : i32
    return %c0_i32, %c0_i32_0 : i32, i32
  }
  func.func @transform_6(%arg0: i32) -> (i32, i32) {
    %c0_i32 = arith.constant 0 : i32
    %c0_i32_0 = arith.constant 0 : i32
    %c0_i32_1 = arith.constant 0 : i32
    return %c0_i32, %c0_i32_0 : i32, i32
  }
  func.func @transform_7(%arg0: i32) -> (i32, i32) {
    %c0_i32 = arith.constant 0 : i32
    %c0_i32_0 = arith.constant 0 : i32
    %c0_i32_1 = arith.constant 0 : i32
    return %c0_i32, %c0_i32_0 : i32, i32
  }
  func.func @transform_8(%arg0: i32) -> (i32, i32) {
    %c0_i32 = arith.constant 0 : i32
    %c0_i32_0 = arith.constant 0 : i32
    %c0_i32_1 = arith.constant 0 : i32
    return %c0_i32, %c0_i32_0 : i32, i32
  }
  func.func @transform_9(%arg0: i32) -> (i32, i32) {
    %c0_i32 = arith.constant 0 : i32
    %c0_i32_0 = arith.constant 0 : i32
    %c0_i32_1 = arith.constant 0 : i32
    return %c0_i32, %c0_i32_0 : i32, i32
  }
  func.func @transform_10(%arg0: i32) -> (i32, i32) {
    %c0_i32 = arith.constant 0 : i32
    %c0_i32_0 = arith.constant 0 : i32
    %c0_i32_1 = arith.constant 0 : i32
    return %c0_i32, %c0_i32_0 : i32, i32
  }
  func.func @transform_11(%arg0: i32) -> (i32, i32) {
    %c0_i32 = arith.constant 0 : i32
    %c0_i32_0 = arith.constant 0 : i32
    %c0_i32_1 = arith.constant 0 : i32
    return %c0_i32, %c0_i32_0 : i32, i32
  }
  func.func @transform_12(%arg0: i32) -> (i32, i32) {
    %c0_i32 = arith.constant 0 : i32
    %c0_i32_0 = arith.constant 0 : i32
    return %arg0, %c0_i32 : i32, i32
  }
}

</mosaic_0001>

<bundles_post_ra>
// kernel: tpu_custom_call.1
= control target key start
LH: loop header
LB: loop body
LE: loop exit
PB: predicated region body
PF: predicated region fallthrough
CT: control target
= control target key end

     0   :  { %17 = vsyncpa [#allocation3], 0  ;;  %s2663_s0 = inlined_call_operand.vmem [shape: s32[16,8], index: 0, kind: input, shape index: {}]   ;;  %s2664_s1 = inlined_call_operand.hbm [shape: f32[3,24,256], index: 1, kind: input, shape index: {}]   ;;  %s2665_s2 = inlined_call_operand.hbm [shape: f32[1,256], index: 2, kind: input, shape index: {}]   ;;  %s2666_s3 = inlined_call_operand.hbm [shape: f32[3,256,512], index: 3, kind: input, shape index: {}]   ;;  %s2667_s4 = inlined_call_operand.hbm [shape: f32[1,512], index: 4, kind: input, shape index: {}]   ;;  %s2668_s5 = inlined_call_operand.vmem [shape: f32[512,64], index: 5, kind: input, shape index: {}]   ;;  %s2669_s6 = inlined_call_operand.vmem [shape: f32[64,32], index: 6, kind: input, shape index: {}]   ;;  %s2670_s7 = inlined_call_operand.hbm [shape: f32[1,32], index: 7, kind: input, shape index: {}]   ;;  %s2671_s8 = inlined_call_operand.hbm [shape: f32[32,32], index: 8, kind: input, shape index: {}]   ;;  %s2672_s9 = inlined_call_operand.hbm [shape: f32[1,32], index: 9, kind: input, shape index: {}]   ;;  %s2673_s10 = inlined_call_operand.hbm [shape: f32[32,128], index: 10, kind: input, shape index: {}]   ;;  %s2674_s11 = inlined_call_operand.hbm [shape: f32[1,128], index: 11, kind: input, shape index: {}]   ;;  %s2675_s12 = inlined_call_operand.hbm [shape: f32[2,128], index: 12, kind: output, shape index: {}]  }
   0x1   :  { %18 = vsyncpa [#allocation6], 0 }
   0x2   :  { %19 = vsyncpa [#allocation9], 0 }
   0x3   :  { %20 = vsyncpa [#allocation12], 0 }
   0x4   :  { %21 = vsyncpa [#allocation15], 0  ;;  %s43_s23 = sshll.u32 %s2665_s2, 4  ;;  %s44_s23 = int_to_ptr.hbm [resolvable:$true] %s43_s23 }
   0x5   :  { %22 = vsyncpa [#allocation4], 0  ;;  %s2063_s24 = smov [#allocation5]   ;;  %s67_s28 = sshll.u32 %s2667_s4, 4  ;;  %s68_s28 = int_to_ptr.hbm [resolvable:$true] %s67_s28 }
   0x6   :  { %s45_s25 = sshll.u32 %s2063_s24, 4  ;;  %s2064_s29 = smov [#allocation8]   ;;  %s46_s25 = int_to_ptr.vmem [resolvable:$true] %s45_s25 }
   0x7   :  { %48 = dma.hbm_to_vmem [thread:$0]  %s44_s23, 32, %s46_s25, [#allocation6]  }
   0x8   :  { %s69_s30 = sshll.u32 %s2064_s29, 4  ;;  %s92_s15 = sshll.u32 %s2671_s8, 4  ;;  %s70_s30 = int_to_ptr.vmem [resolvable:$true] %s69_s30  ;;  %s93_s15 = int_to_ptr.hbm [resolvable:$true] %s92_s15 }
   0x9   :  { %72 = dma.hbm_to_vmem [thread:$0]  %s68_s28, 64, %s70_s30, [#allocation9]  }
   0xa   :  { %s2065_s2 = smov [#allocation11]   ;;  %s116_s19 = sshll.u32 %s2673_s10, 4  ;;  %s117_s19 = int_to_ptr.hbm [resolvable:$true] %s116_s19 }
   0xb   :  { %s94_s16 = sshll.u32 %s2065_s2, 4  ;;  %s2066_s20 = smov 128   ;;  %s95_s16 = int_to_ptr.vmem [resolvable:$true] %s94_s16 }
   0xc   :  { %s2067_s4 = smov 8   ;;  %s2068_s21 = smov [#allocation14]  }
   0xd   :  { %100 = dma.hbm_to_vmem [thread:$0]  %s93_s15, 512, %s95_s16, [#allocation12], %s2066_s20, %s2066_s20, %s2067_s4  }
   0xe   :  { %s118_s22 = sshll.u32 %s2068_s21, 4  ;;  %s29_s8 = sshll.u32 %s2664_s1, 4  ;;  %s119_s22 = int_to_ptr.vmem [resolvable:$true] %s118_s22  ;;  %s30_s8 = int_to_ptr.hbm [resolvable:$true] %s29_s8 }
   0xf   :  { %124 = dma.hbm_to_vmem [thread:$0]  %s117_s19, 512, %s119_s22, [#allocation15], %s2066_s20, %s2066_s20, %s2067_s4  }
  0x10   :  { %s2069_s25 = smov [#allocation2]   ;;  %s53_s28 = sshll.u32 %s2666_s3, 4  ;;  %s54_s28 = int_to_ptr.hbm [resolvable:$true] %s53_s28 }
  0x11   :  { %s31_s26 = sshll.u32 %s2069_s25, 4  ;;  %s2070_s29 = smov 256   ;;  %s32_s26 = int_to_ptr.vmem [resolvable:$true] %s31_s26 }
  0x12   :  { %s2071_s30 = smov 16   ;;  %s2072_s13 = smov [#allocation7]  }
  0x13   :  { %37 = dma.hbm_to_vmem [thread:$0]  %s30_s8, 2304, %s32_s26, [#allocation3], %s2070_s29, %s2070_s29, %s2071_s30  }
  0x14   :  { %s55_s14 = sshll.u32 %s2072_s13, 4  ;;  %s2073_s1 = smov 512   ;;  %s56_s14 = int_to_ptr.vmem [resolvable:$true] %s55_s14 }
  0x15   :  { %s2074_s15 = smov 32   ;;  %s82_s17 = sshll.u32 %s2670_s7, 4  ;;  %s83_s17 = int_to_ptr.hbm [resolvable:$true] %s82_s17 }
  0x16   :  { %61 = dma.hbm_to_vmem [thread:$0]  %s54_s28, 49152, %s56_s14, [#allocation6], %s2073_s1, %s2073_s1, %s2074_s15  }
  0x17   :  { %s2075_s18 = smov [#allocation10]   ;;  %s106_s21 = sshll.u32 %s2672_s9, 4  ;;  %s107_s21 = int_to_ptr.hbm [resolvable:$true] %s106_s21 }
  0x18   :  { %s84_s19 = sshll.u32 %s2075_s18, 4  ;;  %s2076_s22 = smov [#allocation13]   ;;  %s85_s19 = int_to_ptr.vmem [resolvable:$true] %s84_s19 }
  0x19   :  { %87 = dma.hbm_to_vmem [thread:$0]  %s83_s17, 16, %s85_s19, [#allocation9]  }
  0x1a   :  { %s108_s23 = sshll.u32 %s2076_s22, 4  ;;  %s130_s25 = sshll.u32 %s2674_s11, 4  ;;  %s109_s23 = int_to_ptr.vmem [resolvable:$true] %s108_s23  ;;  %s131_s25 = int_to_ptr.hbm [resolvable:$true] %s130_s25 }
  0x1b   :  { %111 = dma.hbm_to_vmem [thread:$0]  %s107_s21, 16, %s109_s23, [#allocation12]  }
  0x1c   :  { %s2077_s7 = smov [#allocation16]  }
  0x1d   :  { %s132_s26 = sshll.u32 %s2077_s7, 4  ;;  %s133_s26 = int_to_ptr.vmem [resolvable:$true] %s132_s26 }
  0x1e   :  { %135 = dma.hbm_to_vmem [thread:$0]  %s131_s25, 16, %s133_s26, [#allocation15]  }
  0x1f   :  { %2051 = dma.done.wait [#allocation3], 2304  }
  0x20   :  { %2052 = vsyncadd [#allocation3], 4294964992 }
  0x21   :  { %2053 = dma.done.wait [#allocation6], 49184  }
  0x22   :  { %2054 = vsyncadd [#allocation6], 4294918112 }
  0x23   :  { %2055 = dma.done.wait [#allocation9], 80  }
  0x24   :  { %2056 = vsyncadd [#allocation9], 4294967216 }
  0x25   :  { %2057 = dma.done.wait [#allocation12], 528  }
  0x26   :  { %2058 = vsyncadd [#allocation12], 4294966768 }
  0x27   :  { %2059 = dma.done.wait [#allocation15], 528  }
  0x28   :  { %2060 = vsyncadd [#allocation15], 4294966768  ;;  %v2178_v0 = vld [vmem:[%s2663_s0 + $0x8] sm:$0xff]  ;;  %v2183_v1 = vld [vmem:[%s2663_s0] sm:$0xff]  ;;  %v2078_v2 = vmov 0.0   ;;  %v214_v25 = vlaneseq  ;;  %vm208_vm6 = vcmask 64512  }
  0x29   :  { %vm181_vm0 = vcmp.eq.s32.totalorder %v2178_v0, 1  ;;  %vm180_vm1 = vcmp.eq.s32.totalorder %v2183_v1, 1  ;;  %vm187_vm2 = vcmp.eq.s32.totalorder %v2178_v0, 2  ;;  %vm186_vm3 = vcmp.eq.s32.totalorder %v2183_v1, 2  ;;  %v244_v7 = vld [vmem:[#allocation2 + $0x50] sm:$0xff]  ;;  %v245_v8 = vld [vmem:[#allocation2 + $0x58] sm:$0xff] }
  0x2a   :  { %v1767_v3 = vsel %vm181_vm0, 1.0, %v2078_v2  ;;  %v1766_v4 = vsel %vm180_vm1, 1.0, %v2078_v2  ;;  %v1769_v5 = vsel %vm187_vm2, 1.0, %v2078_v2  ;;  %v1768_v6 = vsel %vm186_vm3, 1.0, %v2078_v2  ;;  %v242_v9 = vld [vmem:[#allocation2 + $0x40] sm:$0xff]  ;;  %264 = vmatpush.msra.mxu0 %v244_v7  ;;  %287 = vmatpush.msra.mxu1 %v245_v8  ;;  %v243_v10 = vld [vmem:[#allocation2 + $0x48] sm:$0xff] }
  0x2b   :  { %196 = vrot.lane.b32.xlu1 %v1767_v3, %s2067_s4  ;;  %194 = vrot.lane.b32.xlu0 %v1766_v4, %s2067_s4  ;;  %v240_v11 = vld [vmem:[#allocation2 + $0x30] sm:$0xff]  ;;  %v241_v12 = vld [vmem:[#allocation2 + $0x38] sm:$0xff]  ;;  %v237_v13 = vld [vmem:[#allocation2 + $0x20] sm:$0xff]  ;;  %vm175_vm4 = vcmp.eq.s32.totalorder %v2178_v0, 0  ;;  %vm174_vm5 = vcmp.eq.s32.totalorder %v2183_v1, 0  ;;  %v2199_v30 = vshrl.u32 %v214_v25, 7 }
  0x2c   :  { %265 = vmatpush.msra.mxu0 %v242_v9  ;;  %288 = vmatpush.msra.mxu1 %v243_v10  ;;  %v238_v14 = vld [vmem:[#allocation2 + $0x28] sm:$0xff]  ;;  %v235_v15 = vld [vmem:[#allocation2 + $0x10] sm:$0xff]  ;;  %v236_v16 = vld [vmem:[#allocation2 + $0x18] sm:$0xff]  ;;  %v1765_v34 = vsel %vm175_vm4, 1.0, %v2078_v2  ;;  %v1764_v35 = vsel %vm174_vm5, 1.0, %v2078_v2  ;;  %vm211_vm7 = vcmask 130048  }
  0x2d   :  { %316 = vmatpush.msra.mxu2 %v237_v13  ;;  %339 = vmatpush.msra.mxu3 %v238_v14  ;;  %v233_v17 = vld [vmem:[#allocation2] sm:$0xff]  ;;  %v234_v18 = vld [vmem:[#allocation2 + $0x8] sm:$0xff]  ;;  %v361_v21 = vld [vmem:[#allocation2 + $0x70] sm:$0xff]  ;;  %vm246_vm8 = vcmask 195584   ;;  %vm216_vm9 = vcmp.gt.s32.totalorder %v2199_v30, 0  ;;  %vm224_vm10 = vcmask 1040384  }
  0x2e   :  { %266 = vmatpush.msra.mxu0 %v240_v11  ;;  %289 = vmatpush.msra.mxu1 %v241_v12  ;;  %v363_v19 = vld [vmem:[#allocation2 + $0x80] sm:$0xff]  ;;  %v364_v20 = vld [vmem:[#allocation2 + $0x88] sm:$0xff]  ;;  %v362_v22 = vld [vmem:[#allocation2 + $0x78] sm:$0xff]  ;;  %v2210_v49 = vsel %vm216_vm9, 1.0, %v2078_v2  ;;  %vm219_vm11 = vcmp.lt.s32.totalorder %v2199_v30, 7  ;;  %vm349_vm12 = vcmask 1046528  }
  0x2f   :  { %317 = vmatpush.msra.mxu2 %v235_v15  ;;  %340 = vmatpush.msra.mxu3 %v236_v16  ;;  %v359_v23 = vld [vmem:[#allocation2 + $0x60] sm:$0xff]  ;;  %v360_v24 = vld [vmem:[#allocation2 + $0x68] sm:$0xff]  ;;  %v644_v28 = vld [vmem:[#allocation7 + $0x5e0] sm:$0xff]  ;;  %v2229_v10 = vsel %vm219_vm11, 1.0, %v2078_v2  ;;  %vm1599_vm13 = vcmask 523264   ;;  %vm1628_vm14 = vcmask 1041409  }
  0x30   :  { %384 = vmatpush.msrb.mxu0 %v363_v19  ;;  %407 = vmatpush.msrb.mxu1 %v364_v20  ;;  %v708_v29 = vld [vmem:[#allocation7 + $0x7e0] sm:$0xff]  ;;  %v645_v43 = vld [vmem:[#allocation7 + $0x5e8] sm:$0xff]  ;;  %vm1661_vm15 = vcmask 261120   ;;  %vm1717_vm0 = vcmask 1041408   ;;  %s1750_s14 = sshll.u32 %s2675_s12, 4  ;;  %s1751_s14 = int_to_ptr.hbm [resolvable:$true] %s1750_s14 }
  0x31   :  { %318 = vmatpush.msra.mxu2 %v233_v17  ;;  %341 = vmatpush.msra.mxu3 %v234_v18  ;;  %v640_v31 = vld [vmem:[#allocation7 + $0x5c0] sm:$0xff]  ;;  %v709_v44 = vld [vmem:[#allocation7 + $0x7e8] sm:$0xff] }
  0x32   :  { %385 = vmatpush.msrb.mxu0 %v361_v21  ;;  %408 = vmatpush.msrb.mxu1 %v362_v22  ;;  %v704_v32 = vld [vmem:[#allocation7 + $0x7c0] sm:$0xff]  ;;  %v641_v50 = vld [vmem:[#allocation7 + $0x5c8] sm:$0xff] }
  0x33   :  { %204 = vrot.lane.b32.xlu1 %v1769_v5, %s2071_s30  ;;  %202 = vrot.lane.b32.xlu0 %v1768_v6, %s2071_s30  ;;  %v636_v33 = vld [vmem:[#allocation7 + $0x5a0] sm:$0xff]  ;;  %v705_v52 = vld [vmem:[#allocation7 + $0x7c8] sm:$0xff] }
  0x34   :  { %386 = vmatpush.msrb.mxu0 %v359_v23  ;;  %409 = vmatpush.msrb.mxu1 %v360_v24  ;;  %v700_v36 = vld [vmem:[#allocation7 + $0x7a0] sm:$0xff]  ;;  %v637_v56 = vld [vmem:[#allocation7 + $0x5a8] sm:$0xff] }
  0x35   :  { %712 = vmatpush.msrb.mxu2 %v644_v28  ;;  %735 = vmatpush.msrb.mxu3 %v708_v29  ;;  %v632_v37 = vld [vmem:[#allocation7 + $0x580] sm:$0xff]  ;;  %v701_v57 = vld [vmem:[#allocation7 + $0x7a8] sm:$0xff] }
  0x36   :  { %v696_v38 = vld [vmem:[#allocation7 + $0x780] sm:$0xff]  ;;  %v633_v61 = vld [vmem:[#allocation7 + $0x588] sm:$0xff] }
  0x37   :  { %713 = vmatpush.msrb.mxu2 %v640_v31  ;;  %736 = vmatpush.msrb.mxu3 %v704_v32  ;;  %v628_v46 = vld [vmem:[#allocation7 + $0x560] sm:$0xff]  ;;  %v697_v62 = vld [vmem:[#allocation7 + $0x788] sm:$0xff] }
  0x38   :  { %v692_v47 = vld [vmem:[#allocation7 + $0x760] sm:$0xff]  ;;  %v629_v5 = vld [vmem:[#allocation7 + $0x568] sm:$0xff] }
  0x39   :  { %714 = vmatpush.msrb.mxu2 %v636_v33  ;;  %737 = vmatpush.msrb.mxu3 %v700_v36  ;;  %v624_v53 = vld [vmem:[#allocation7 + $0x540] sm:$0xff]  ;;  %v693_v6 = vld [vmem:[#allocation7 + $0x768] sm:$0xff] }
  0x3a   :  { %v688_v59 = vld [vmem:[#allocation7 + $0x740] sm:$0xff]  ;;  %v625_v12 = vld [vmem:[#allocation7 + $0x548] sm:$0xff] }
  0x3b   :  { %715 = vmatpush.msrb.mxu2 %v632_v37  ;;  %738 = vmatpush.msrb.mxu3 %v696_v38  ;;  %v620_v60 = vld [vmem:[#allocation7 + $0x520] sm:$0xff]  ;;  %v689_v13 = vld [vmem:[#allocation7 + $0x748] sm:$0xff] }
  0x3c   :  { %v684_v1 = vld [vmem:[#allocation7 + $0x720] sm:$0xff]  ;;  %v621_v2 = vld [vmem:[#allocation7 + $0x528] sm:$0xff] }
  0x3d   :  { %716 = vmatpush.msrb.mxu2 %v628_v46  ;;  %739 = vmatpush.msrb.mxu3 %v692_v47  ;;  %v616_v3 = vld [vmem:[#allocation7 + $0x500] sm:$0xff]  ;;  %v685_v17 = vld [vmem:[#allocation7 + $0x728] sm:$0xff]  ;;  %v646_v47 = vld [vmem:[#allocation7 + $0x5f0] sm:$0xff] }
  0x3e   :  { %v680_v7 = vld [vmem:[#allocation7 + $0x700] sm:$0xff]  ;;  %v617_v20 = vld [vmem:[#allocation7 + $0x508] sm:$0xff] }
  0x3f   :  { %717 = vmatpush.msrb.mxu2 %v624_v53  ;;  %740 = vmatpush.msrb.mxu3 %v688_v59  ;;  %v612_v8 = vld [vmem:[#allocation7 + $0x4e0] sm:$0xff]  ;;  %v681_v21 = vld [vmem:[#allocation7 + $0x708] sm:$0xff]  ;;  %v643_v59 = vld [vmem:[#allocation7 + $0x5d8] sm:$0xff] }
  0x40   :  { %v676_v14 = vld [vmem:[#allocation7 + $0x6e0] sm:$0xff]  ;;  %v613_v24 = vld [vmem:[#allocation7 + $0x4e8] sm:$0xff] }
  0x41   :  { %718 = vmatpush.msrb.mxu2 %v620_v60  ;;  %741 = vmatpush.msrb.mxu3 %v684_v1  ;;  %v608_v15 = vld [vmem:[#allocation7 + $0x4c0] sm:$0xff]  ;;  %v677_v25 = vld [vmem:[#allocation7 + $0x6e8] sm:$0xff]  ;;  %v707_v60 = vld [vmem:[#allocation7 + $0x7d8] sm:$0xff] }
  0x42   :  { %v672_v18 = vld [vmem:[#allocation7 + $0x6c0] sm:$0xff]  ;;  %v609_v29 = vld [vmem:[#allocation7 + $0x4c8] sm:$0xff]  ;;  %v698_v1 = vld [vmem:[#allocation7 + $0x790] sm:$0xff] }
  0x43   :  { %719 = vmatpush.msrb.mxu2 %v616_v3  ;;  %742 = vmatpush.msrb.mxu3 %v680_v7  ;;  %v604_v19 = vld [vmem:[#allocation7 + $0x4a0] sm:$0xff]  ;;  %v673_v30 = vld [vmem:[#allocation7 + $0x6c8] sm:$0xff]  ;;  %v635_v3 = vld [vmem:[#allocation7 + $0x598] sm:$0xff] }
  0x44   :  { %v668_v22 = vld [vmem:[#allocation7 + $0x6a0] sm:$0xff]  ;;  %v605_v32 = vld [vmem:[#allocation7 + $0x4a8] sm:$0xff]  ;;  %v631_v7 = vld [vmem:[#allocation7 + $0x578] sm:$0xff] }
  0x45   :  { %720 = vmatpush.msrb.mxu2 %v612_v8  ;;  %743 = vmatpush.msrb.mxu3 %v676_v14  ;;  %v600_v23 = vld [vmem:[#allocation7 + $0x480] sm:$0xff]  ;;  %v669_v33 = vld [vmem:[#allocation7 + $0x6a8] sm:$0xff]  ;;  %v695_v8 = vld [vmem:[#allocation7 + $0x778] sm:$0xff] }
  0x46   :  { %v596_v28 = vld [vmem:[#allocation7 + $0x460] sm:$0xff]  ;;  %v601_v36 = vld [vmem:[#allocation7 + $0x488] sm:$0xff]  ;;  %v622_v14 = vld [vmem:[#allocation7 + $0x530] sm:$0xff] }
  0x47   :  { %721 = vmatpush.msrb.mxu2 %v608_v15  ;;  %744 = vmatpush.msrb.mxu3 %v672_v18  ;;  %v665_v37 = vld [vmem:[#allocation7 + $0x688] sm:$0xff]  ;;  %v656_v38 = vld [vmem:[#allocation7 + $0x640] sm:$0xff]  ;;  %v686_v15 = vld [vmem:[#allocation7 + $0x730] sm:$0xff] }
  0x48   :  { %v648_v46 = vld [vmem:[#allocation7 + $0x600] sm:$0xff]  ;;  %v585_v53 = vld [vmem:[#allocation7 + $0x408] sm:$0xff]  ;;  %v682_v18 = vld [vmem:[#allocation7 + $0x710] sm:$0xff] }
  0x49   :  { %722 = vmatpush.msrb.mxu2 %v604_v19  ;;  %745 = vmatpush.msrb.mxu3 %v668_v22  ;;  %v619_v19 = vld [vmem:[#allocation7 + $0x518] sm:$0xff]  ;;  %v678_v22 = vld [vmem:[#allocation7 + $0x6f0] sm:$0xff] }
  0x4b   :  { %723 = vmatpush.msrb.mxu2 %v600_v23  ;;  %v615_v23 = vld [vmem:[#allocation7 + $0x4f8] sm:$0xff] }
  0x4d   :  { %724 = vmatpush.msrb.mxu2 %v596_v28  ;;  %v675_v28 = vld [vmem:[#allocation7 + $0x6d8] sm:$0xff] }
  0x9d   :  { %v197_v26 = vpop.permute.xlu1 %196  ;;  %v195_v27 = vpop.permute.xlu0 %194 }
  0x9e   :  { %v210_v39 = vsel %vm208_vm6, %v1765_v34, %v197_v26  ;;  %v209_v40 = vsel %vm208_vm6, %v1764_v35, %v195_v27  ;;  %v664_v27 = vld [vmem:[#allocation7 + $0x680] sm:$0xff] }
  0x9f   :  { %746 = vmatpush.msrb.mxu3 %v664_v27  ;;  %v660_v34 = vld [vmem:[#allocation7 + $0x660] sm:$0xff]  ;;  %v611_v27 = vld [vmem:[#allocation7 + $0x4d8] sm:$0xff] }
  0xa0   :  { %v592_v35 = vld [vmem:[#allocation7 + $0x440] sm:$0xff] }
  0xa1   :  { %747 = vmatpush.msrb.mxu3 %v660_v34  ;;  %725 = vmatpush.msrb.mxu2 %v592_v35  ;;  %v666_v34 = vld [vmem:[#allocation7 + $0x690] sm:$0xff]  ;;  %v603_v35 = vld [vmem:[#allocation7 + $0x498] sm:$0xff] }
  0xa3   :  { %748 = vmatpush.msrb.mxu3 %v656_v38  ;;  %v662_v38 = vld [vmem:[#allocation7 + $0x670] sm:$0xff] }
  0xa5   :  { %v205_v41 = vpop.permute.xlu1 %204  ;;  %v203_v42 = vpop.permute.xlu0 %202 }
  0xa6   :  { %v212_v45 = vsel %vm211_vm7, %v209_v40, %v203_v42  ;;  %v2213_v51 = vsel %vm211_vm7, %v210_v39, %v205_v41  ;;  %v588_v39 = vld [vmem:[#allocation7 + $0x420] sm:$0xff]  ;;  %v597_v40 = vld [vmem:[#allocation7 + $0x468] sm:$0xff] }
  0xa7   :  { %v225_v48 = vrot.slane %v212_v45, 7  ;;  %1772 = vmatmul.msk.f32.vlgmr.msra.gmra.mxu0 %vm246_vm8, %v212_v45  ;;  %1774 = vmatmul.msk.f32.vlgmr.msra.gmra.mxu1 %vm246_vm8, %v212_v45  ;;  %v226_v58 = vrot.slane %v2213_v51, 7  ;;  %v351_v63 = vrot.slane %v2213_v51, 1  ;;  %v350_v0 = vrot.slane %v212_v45, 1  ;;  %v661_v41 = vld [vmem:[#allocation7 + $0x668] sm:$0xff]  ;;  %v652_v42 = vld [vmem:[#allocation7 + $0x620] sm:$0xff] }
  0xa8   :  { %758 = vmatpush.msra.mxu0 %v645_v43  ;;  %781 = vmatpush.msra.mxu1 %v709_v44  ;;  %v584_v43 = vld [vmem:[#allocation7 + $0x400] sm:$0xff]  ;;  %v593_v44 = vld [vmem:[#allocation7 + $0x448] sm:$0xff] }
  0xa9   :  { %v230_v54 = vsel %vm224_vm10, 0.0, %v225_v48  ;;  %v227_v4 = vsel %vm224_vm10, %v225_v48, %v226_v58  ;;  %v352_v11 = vsel %vm349_vm12, %v350_v0, %v351_v63  ;;  %v355_v26 = vsel %vm349_vm12, %v351_v63, 0.0  ;;  %v657_v45 = vld [vmem:[#allocation7 + $0x648] sm:$0xff]  ;;  %726 = vmatpush.msrb.mxu2 %v588_v39  ;;  %749 = vmatpush.msrb.mxu3 %v652_v42  ;;  %v638_v58 = vld [vmem:[#allocation7 + $0x5b0] sm:$0xff]  ;;  %v639_v63 = vld [vmem:[#allocation7 + $0x5b8] sm:$0xff] }
  0xaa   :  { %v231_v55 = vmul.f32 %v2210_v49, %v230_v54  ;;  %759 = vmatpush.msra.mxu0 %v641_v50  ;;  %782 = vmatpush.msra.mxu1 %v705_v52  ;;  %v232_v9 = vmul.f32 %v2210_v49, %v227_v4  ;;  %v356_v16 = vmul.f32 %v2229_v10, %v352_v11  ;;  %v589_v48 = vld [vmem:[#allocation7 + $0x428] sm:$0xff]  ;;  %v642_v52 = vld [vmem:[#allocation7 + $0x5d0] sm:$0xff]  ;;  %v703_v0 = vld [vmem:[#allocation7 + $0x7b8] sm:$0xff] }
  0xab   :  { %v357_v31 = vmul.f32 %v2229_v10, %v355_v26  ;;  %v653_v50 = vld [vmem:[#allocation7 + $0x628] sm:$0xff]  ;;  %727 = vmatpush.msrb.mxu2 %v584_v43  ;;  %750 = vmatpush.msrb.mxu3 %v648_v46  ;;  %v699_v4 = vld [vmem:[#allocation7 + $0x798] sm:$0xff]  ;;  %v690_v11 = vld [vmem:[#allocation7 + $0x750] sm:$0xff] }
  0xac   :  { %1776 = vmatmul.msk.f32.vlgmr.msra.gmra.mxu2 %vm246_vm8, %v231_v55  ;;  %1778 = vmatmul.msk.f32.vlgmr.msra.gmra.mxu3 %vm246_vm8, %v231_v55  ;;  %v649_v54 = vld [vmem:[#allocation7 + $0x608] sm:$0xff]  ;;  %v647_v55 = vld [vmem:[#allocation7 + $0x5f8] sm:$0xff]  ;;  %v674_v26 = vld [vmem:[#allocation7 + $0x6d0] sm:$0xff] }
  0xad   :  { %760 = vmatpush.msra.mxu0 %v637_v56  ;;  %783 = vmatpush.msra.mxu1 %v701_v57  ;;  %v711_v56 = vld [vmem:[#allocation7 + $0x7f8] sm:$0xff]  ;;  %v706_v57 = vld [vmem:[#allocation7 + $0x7d0] sm:$0xff] }
  0xae   :  { %804 = vmatpush.msra.mxu2 %v646_v47  ;;  %v599_v39 = vld [vmem:[#allocation7 + $0x478] sm:$0xff]  ;;  %v658_v42 = vld [vmem:[#allocation7 + $0x650] sm:$0xff] }
  0xaf   :  { %1773 = vmatmul.msk.f32.gmra.mxu0 %vm246_vm8, %v2213_v51  ;;  %1775 = vmatmul.msk.f32.gmra.mxu1 %vm246_vm8, %v2213_v51  ;;  %v710_v51 = vld [vmem:[#allocation7 + $0x7f0] sm:$0xff]  ;;  %v595_v43 = vld [vmem:[#allocation7 + $0x458] sm:$0xff] }
  0xb0   :  { %761 = vmatpush.msra.mxu0 %v633_v61  ;;  %784 = vmatpush.msra.mxu1 %v697_v62  ;;  %v702_v61 = vld [vmem:[#allocation7 + $0x7b0] sm:$0xff]  ;;  %v591_v47 = vld [vmem:[#allocation7 + $0x438] sm:$0xff] }
  0xb1   :  { %827 = vmatpush.msra.mxu3 %v710_v51  ;;  %805 = vmatpush.msra.mxu2 %v642_v52  ;;  %v634_v62 = vld [vmem:[#allocation7 + $0x590] sm:$0xff]  ;;  %v587_v52 = vld [vmem:[#allocation7 + $0x418] sm:$0xff] }
  0xb2   :  { %762 = vmatpush.msra.mxu0 %v629_v5  ;;  %785 = vmatpush.msra.mxu1 %v693_v6  ;;  %v630_v5 = vld [vmem:[#allocation7 + $0x570] sm:$0xff] }
  0xb3   :  { %828 = vmatpush.msra.mxu3 %v706_v57  ;;  %806 = vmatpush.msra.mxu2 %v638_v58  ;;  %v694_v6 = vld [vmem:[#allocation7 + $0x770] sm:$0xff] }
  0xb4   :  { %1777 = vmatmul.msk.f32.gmra.mxu2 %vm246_vm8, %v232_v9  ;;  %1779 = vmatmul.msk.f32.gmra.mxu3 %vm246_vm8, %v232_v9  ;;  %v626_v9 = vld [vmem:[#allocation7 + $0x550] sm:$0xff] }
  0xb5   :  { %763 = vmatpush.msra.mxu0 %v625_v12  ;;  %786 = vmatpush.msra.mxu1 %v689_v13  ;;  %v627_v12 = vld [vmem:[#allocation7 + $0x558] sm:$0xff]  ;;  %v654_v46 = vld [vmem:[#allocation7 + $0x630] sm:$0xff] }
  0xb6   :  { %829 = vmatpush.msra.mxu3 %v702_v61  ;;  %807 = vmatpush.msra.mxu2 %v634_v62  ;;  %v691_v13 = vld [vmem:[#allocation7 + $0x758] sm:$0xff]  ;;  %v650_v51 = vld [vmem:[#allocation7 + $0x610] sm:$0xff] }
  0xb7   :  { %1780 = vmatmul.msk.f32.vlgmr.msrb.gmra.mxu0 %vm246_vm8, %v356_v16  ;;  %1782 = vmatmul.msk.f32.vlgmr.msrb.gmra.mxu1 %vm246_vm8, %v356_v16  ;;  %v623_v16 = vld [vmem:[#allocation7 + $0x538] sm:$0xff] }
  0xb8   :  { %764 = vmatpush.msra.mxu0 %v621_v2  ;;  %787 = vmatpush.msra.mxu1 %v685_v17  ;;  %v687_v2 = vld [vmem:[#allocation7 + $0x738] sm:$0xff]  ;;  %v618_v17 = vld [vmem:[#allocation7 + $0x510] sm:$0xff] }
  0xb9   :  { %830 = vmatpush.msra.mxu3 %v698_v1  ;;  %808 = vmatpush.msra.mxu2 %v630_v5 }
  0xba   :  { %765 = vmatpush.msra.mxu0 %v617_v20  ;;  %788 = vmatpush.msra.mxu1 %v681_v21  ;;  %v683_v20 = vld [vmem:[#allocation7 + $0x718] sm:$0xff]  ;;  %v614_v21 = vld [vmem:[#allocation7 + $0x4f0] sm:$0xff] }
  0xbb   :  { %831 = vmatpush.msra.mxu3 %v694_v6  ;;  %809 = vmatpush.msra.mxu2 %v626_v9 }
  0xbc   :  { %766 = vmatpush.msra.mxu0 %v613_v24  ;;  %789 = vmatpush.msra.mxu1 %v677_v25  ;;  %v679_v24 = vld [vmem:[#allocation7 + $0x6f8] sm:$0xff]  ;;  %v610_v25 = vld [vmem:[#allocation7 + $0x4d0] sm:$0xff] }
  0xbd   :  { %832 = vmatpush.msra.mxu3 %v690_v11  ;;  %810 = vmatpush.msra.mxu2 %v622_v14  ;;  %v579_v14 = vld [vmem:[#allocation7 + $0x3e0] sm:$0xff] }
  0xbe   :  { %767 = vmatpush.msra.mxu0 %v609_v29  ;;  %790 = vmatpush.msra.mxu1 %v673_v30  ;;  %v606_v29 = vld [vmem:[#allocation7 + $0x4b0] sm:$0xff] }
  0xbf   :  { %1781 = vmatmul.msk.f32.gmra.mxu0 %vm246_vm8, %v357_v31  ;;  %1783 = vmatmul.msk.f32.gmra.mxu1 %vm246_vm8, %v357_v31  ;;  %v670_v30 = vld [vmem:[#allocation7 + $0x6b0] sm:$0xff]  ;;  %v607_v31 = vld [vmem:[#allocation7 + $0x4b8] sm:$0xff] }
  0xc0   :  { %768 = vmatpush.msra.mxu0 %v605_v32  ;;  %791 = vmatpush.msra.mxu1 %v669_v33  ;;  %v671_v32 = vld [vmem:[#allocation7 + $0x6b8] sm:$0xff]  ;;  %v602_v33 = vld [vmem:[#allocation7 + $0x490] sm:$0xff] }
  0xc1   :  { %833 = vmatpush.msra.mxu3 %v686_v15  ;;  %811 = vmatpush.msra.mxu2 %v618_v17  ;;  %v580_v17 = vld [vmem:[#allocation7 + $0x3e8] sm:$0xff] }
  0xc2   :  { %769 = vmatpush.msra.mxu0 %v601_v36  ;;  %792 = vmatpush.msra.mxu1 %v665_v37  ;;  %v667_v36 = vld [vmem:[#allocation7 + $0x698] sm:$0xff]  ;;  %v598_v37 = vld [vmem:[#allocation7 + $0x470] sm:$0xff] }
  0xc3   :  { %834 = vmatpush.msra.mxu3 %v682_v18  ;;  %812 = vmatpush.msra.mxu2 %v614_v21  ;;  %v575_v21 = vld [vmem:[#allocation7 + $0x3c0] sm:$0xff] }
  0xc4   :  { %770 = vmatpush.msra.mxu0 %v597_v40  ;;  %793 = vmatpush.msra.mxu1 %v661_v41  ;;  %v663_v40 = vld [vmem:[#allocation7 + $0x678] sm:$0xff]  ;;  %v594_v41 = vld [vmem:[#allocation7 + $0x450] sm:$0xff] }
  0xc5   :  { %835 = vmatpush.msra.mxu3 %v678_v22  ;;  %813 = vmatpush.msra.mxu2 %v610_v25  ;;  %v576_v25 = vld [vmem:[#allocation7 + $0x3c8] sm:$0xff] }
  0xc6   :  { %771 = vmatpush.msra.mxu0 %v593_v44  ;;  %794 = vmatpush.msra.mxu1 %v657_v45  ;;  %v659_v44 = vld [vmem:[#allocation7 + $0x658] sm:$0xff]  ;;  %v590_v45 = vld [vmem:[#allocation7 + $0x430] sm:$0xff] }
  0xc7   :  { %836 = vmatpush.msra.mxu3 %v674_v26  ;;  %814 = vmatpush.msra.mxu2 %v606_v29  ;;  %v507_v26 = vld [vmem:[#allocation7 + $0x1a0] sm:$0xff] }
  0xc8   :  { %772 = vmatpush.msra.mxu0 %v589_v48  ;;  %795 = vmatpush.msra.mxu1 %v653_v50  ;;  %v655_v48 = vld [vmem:[#allocation7 + $0x638] sm:$0xff]  ;;  %v586_v50 = vld [vmem:[#allocation7 + $0x410] sm:$0xff] }
  0xc9   :  { %837 = vmatpush.msra.mxu3 %v670_v30  ;;  %815 = vmatpush.msra.mxu2 %v602_v33  ;;  %v508_v30 = vld [vmem:[#allocation7 + $0x1a8] sm:$0xff]  ;;  %v567_v33 = vld [vmem:[#allocation7 + $0x380] sm:$0xff] }
  0xca   :  { %773 = vmatpush.msra.mxu0 %v585_v53  ;;  %796 = vmatpush.msra.mxu1 %v649_v54  ;;  %v651_v53 = vld [vmem:[#allocation7 + $0x618] sm:$0xff] }
  0xcb   :  { %838 = vmatpush.msra.mxu3 %v666_v34  ;;  %816 = vmatpush.msra.mxu2 %v598_v37  ;;  %v568_v37 = vld [vmem:[#allocation7 + $0x388] sm:$0xff] }
  0xcc   :  { %850 = vmatpush.msrb.mxu0 %v647_v55  ;;  %873 = vmatpush.msrb.mxu1 %v711_v56 }
  0xcd   :  { %839 = vmatpush.msra.mxu3 %v662_v38  ;;  %817 = vmatpush.msra.mxu2 %v594_v41  ;;  %v499_v41 = vld [vmem:[#allocation7 + $0x160] sm:$0xff] }
  0xce   :  { %851 = vmatpush.msrb.mxu0 %v643_v59  ;;  %874 = vmatpush.msrb.mxu1 %v707_v60  ;;  %v421_v60 = vld [vmem:[#allocation5] sm:$0x3] }
  0xcf   :  { %840 = vmatpush.msra.mxu3 %v658_v42  ;;  %818 = vmatpush.msra.mxu2 %v590_v45  ;;  %v563_v42 = vld [vmem:[#allocation7 + $0x360] sm:$0xff] }
  0xd0   :  { %852 = vmatpush.msrb.mxu0 %v639_v63  ;;  %875 = vmatpush.msrb.mxu1 %v703_v0  ;;  %v423_v63 = vperm.slane %v421_v60, 0  ;;  %v424_v0 = vperm.slane %v421_v60, 1  ;;  %v552_v60 = vld [vmem:[#allocation7 + $0x308] sm:$0xff] }
  0xd1   :  { %841 = vmatpush.msra.mxu3 %v654_v46  ;;  %819 = vmatpush.msra.mxu2 %v586_v50  ;;  %v496_v50 = vld [vmem:[#allocation7 + $0x148] sm:$0xff] }
  0xd2   :  { %853 = vmatpush.msrb.mxu0 %v635_v3  ;;  %876 = vmatpush.msrb.mxu1 %v699_v4 }
  0xd3   :  { %842 = vmatpush.msra.mxu3 %v650_v51  ;;  %v560_v51 = vld [vmem:[#allocation7 + $0x348] sm:$0xff] }
  0xd4   :  { %854 = vmatpush.msrb.mxu0 %v631_v7  ;;  %877 = vmatpush.msrb.mxu1 %v695_v8 }
  0xd6   :  { %855 = vmatpush.msrb.mxu0 %v627_v12  ;;  %878 = vmatpush.msrb.mxu1 %v691_v13  ;;  %v515_v13 = vld [vmem:[#allocation7 + $0x1e0] sm:$0xff] }
  0xd8   :  { %856 = vmatpush.msrb.mxu0 %v623_v16  ;;  %879 = vmatpush.msrb.mxu1 %v687_v2  ;;  %v516_v2 = vld [vmem:[#allocation7 + $0x1e8] sm:$0xff] }
  0xda   :  { %857 = vmatpush.msrb.mxu0 %v619_v19  ;;  %880 = vmatpush.msrb.mxu1 %v683_v20  ;;  %v511_v20 = vld [vmem:[#allocation7 + $0x1c0] sm:$0xff] }
  0xdc   :  { %858 = vmatpush.msrb.mxu0 %v615_v23  ;;  %881 = vmatpush.msrb.mxu1 %v679_v24  ;;  %v512_v24 = vld [vmem:[#allocation7 + $0x1c8] sm:$0xff] }
  0xde   :  { %859 = vmatpush.msrb.mxu0 %v611_v27  ;;  %882 = vmatpush.msrb.mxu1 %v675_v28  ;;  %v571_v27 = vld [vmem:[#allocation7 + $0x3a0] sm:$0xff] }
  0xe0   :  { %860 = vmatpush.msrb.mxu0 %v607_v31  ;;  %883 = vmatpush.msrb.mxu1 %v671_v32  ;;  %v572_v31 = vld [vmem:[#allocation7 + $0x3a8] sm:$0xff]  ;;  %v503_v32 = vld [vmem:[#allocation7 + $0x180] sm:$0xff] }
  0xe2   :  { %861 = vmatpush.msrb.mxu0 %v603_v35  ;;  %884 = vmatpush.msrb.mxu1 %v667_v36  ;;  %v504_v36 = vld [vmem:[#allocation7 + $0x188] sm:$0xff] }
  0xe4   :  { %862 = vmatpush.msrb.mxu0 %v599_v39  ;;  %885 = vmatpush.msrb.mxu1 %v663_v40 }
  0xe6   :  { %863 = vmatpush.msrb.mxu0 %v595_v43  ;;  %886 = vmatpush.msrb.mxu1 %v659_v44  ;;  %v500_v43 = vld [vmem:[#allocation7 + $0x168] sm:$0xff] }
  0xe7   :  { %v564_v44 = vld [vmem:[#allocation7 + $0x368] sm:$0xff] }
  0xe8   :  { %864 = vmatpush.msrb.mxu0 %v591_v47  ;;  %887 = vmatpush.msrb.mxu1 %v655_v48  ;;  %v495_v47 = vld [vmem:[#allocation7 + $0x140] sm:$0xff] }
  0xe9   :  { %v559_v48 = vld [vmem:[#allocation7 + $0x340] sm:$0xff] }
  0xea   :  { %865 = vmatpush.msrb.mxu0 %v587_v52  ;;  %888 = vmatpush.msrb.mxu1 %v651_v53  ;;  %v491_v53 = vld [vmem:[#allocation7 + $0x120] sm:$0xff] }
 0x124   :  { %v268_v54 = vpop.f32.mrf.mxu0  ;;  %v291_v55 = vpop.f32.mrf.mxu1 }
 0x12c   :  { %v271_v56 = vpop.f32.mrf.mxu0  ;;  %v294_v57 = vpop.f32.mrf.mxu1 }
 0x12f   :  { %v320_v58 = vpop.f32.mrf.mxu2  ;;  %v343_v59 = vpop.f32.mrf.mxu3 }
 0x130   :  { %v321_v61 = vadd.f32 %v320_v58, %v268_v54  ;;  %v344_v62 = vadd.f32 %v343_v59, %v291_v55  ;;  %v555_v54 = vld [vmem:[#allocation7 + $0x320] sm:$0xff]  ;;  %v492_v55 = vld [vmem:[#allocation7 + $0x128] sm:$0xff] }
 0x131   :  { %v551_v58 = vld [vmem:[#allocation7 + $0x300] sm:$0xff]  ;;  %v488_v59 = vld [vmem:[#allocation7 + $0x108] sm:$0xff] }
 0x134   :  { %v388_v1 = vpop.f32.mrf.mxu0  ;;  %v411_v3 = vpop.f32.mrf.mxu1 }
 0x135   :  { %v417_v4 = vadd.f32 %v388_v1, %v321_v61  ;;  %v418_v5 = vadd.f32 %v411_v3, %v344_v62  ;;  %v483_v61 = vld [vmem:[#allocation7 + $0xe0] sm:$0xff] }
 0x136   :  { %v547_v62 = vld [vmem:[#allocation7 + $0x2e0] sm:$0xff] }
 0x137   :  { %v427_v6 = vadd.f32 %v423_v63, %v417_v4  ;;  %v428_v7 = vadd.f32 %v424_v0, %v418_v5  ;;  %v323_v8 = vpop.f32.mrf.mxu2  ;;  %v346_v9 = vpop.f32.mrf.mxu3  ;;  %v479_v1 = vld [vmem:[#allocation7 + $0xc0] sm:$0xff]  ;;  %v480_v4 = vld [vmem:[#allocation7 + $0xc8] sm:$0xff] }
 0x138   :  { %v324_v15 = vadd.f32 %v323_v8, %v271_v56  ;;  %v347_v16 = vadd.f32 %v346_v9, %v294_v57  ;;  %v556_v56 = vld [vmem:[#allocation7 + $0x328] sm:$0xff]  ;;  %v487_v57 = vld [vmem:[#allocation7 + $0x100] sm:$0xff] }
 0x139   :  { %v2241_v11 = vmax.f32 %v427_v6, 0.0  ;;  %v2243_v12 = vmax.f32 %v428_v7, 0.0  ;;  %v543_v3 = vld [vmem:[#allocation7 + $0x2c0] sm:$0xff]  ;;  %v544_v5 = vld [vmem:[#allocation7 + $0x2c8] sm:$0xff] }
 0x13a   :  { %v475_v6 = vld [vmem:[#allocation7 + $0xa0] sm:$0xff]  ;;  %v476_v8 = vld [vmem:[#allocation7 + $0xa8] sm:$0xff] }
 0x13b   :  { %728 = vmatmul.f32.vlgmr.msrb.gmra.mxu2 %v2241_v11  ;;  %751 = vmatmul.f32.vlgmr.msrb.gmra.mxu3 %v2243_v12  ;;  %v1080_v38 = vrot.slane %v2241_v11, 1  ;;  %v1083_v46 = vrot.slane %v2243_v12, 1  ;;  %v539_v7 = vld [vmem:[#allocation7 + $0x2a0] sm:$0xff]  ;;  %v540_v9 = vld [vmem:[#allocation7 + $0x2a8] sm:$0xff] }
 0x13c   :  { %774 = vmatmul.f32.vlgmr.msra.gmra.mxu0 %v2241_v11  ;;  %797 = vmatmul.f32.vlgmr.msra.gmra.mxu1 %v2243_v12  ;;  %v391_v18 = vpop.f32.mrf.mxu0  ;;  %v414_v19 = vpop.f32.mrf.mxu1 }
 0x13d   :  { %896 = vmatpush.msrb.mxu2 %v515_v13  ;;  %919 = vmatpush.msrb.mxu3 %v579_v14  ;;  %v419_v22 = vadd.f32 %v391_v18, %v324_v15  ;;  %v420_v23 = vadd.f32 %v414_v19, %v347_v16  ;;  %v471_v13 = vld [vmem:[#allocation7 + $0x80] sm:$0xff]  ;;  %v472_v15 = vld [vmem:[#allocation7 + $0x88] sm:$0xff] }
 0x13e   :  { %942 = vmatpush.msra.mxu0 %v516_v2  ;;  %965 = vmatpush.msra.mxu1 %v580_v17  ;;  %v535_v14 = vld [vmem:[#allocation7 + $0x280] sm:$0xff]  ;;  %v536_v16 = vld [vmem:[#allocation7 + $0x288] sm:$0xff] }
 0x13f   :  { %v429_v28 = vadd.f32 %v423_v63, %v419_v22  ;;  %v430_v29 = vadd.f32 %v424_v0, %v420_v23  ;;  %897 = vmatpush.msrb.mxu2 %v511_v20  ;;  %920 = vmatpush.msrb.mxu3 %v575_v21  ;;  %v484_v63 = vld [vmem:[#allocation7 + $0xe8] sm:$0xff]  ;;  %v467_v2 = vld [vmem:[#allocation7 + $0x60] sm:$0xff] }
 0x140   :  { %943 = vmatpush.msra.mxu0 %v512_v24  ;;  %966 = vmatpush.msra.mxu1 %v576_v25  ;;  %v548_v0 = vld [vmem:[#allocation7 + $0x2e8] sm:$0xff]  ;;  %v531_v17 = vld [vmem:[#allocation7 + $0x260] sm:$0xff] }
 0x141   :  { %v2249_v34 = vmax.f32 %v429_v28, 0.0  ;;  %v2251_v35 = vmax.f32 %v430_v29, 0.0  ;;  %898 = vmatpush.msrb.mxu2 %v507_v26  ;;  %921 = vmatpush.msrb.mxu3 %v571_v27  ;;  %v468_v18 = vld [vmem:[#allocation7 + $0x68] sm:$0xff]  ;;  %v463_v20 = vld [vmem:[#allocation7 + $0x40] sm:$0xff]  ;;  %v439_v26 = vrot.slane %v2241_v11, 7  ;;  %v440_v27 = vrot.slane %v2243_v12, 7 }
 0x142   :  { %944 = vmatpush.msra.mxu0 %v508_v30  ;;  %967 = vmatpush.msra.mxu1 %v572_v31  ;;  %v532_v19 = vld [vmem:[#allocation7 + $0x268] sm:$0xff]  ;;  %v527_v21 = vld [vmem:[#allocation7 + $0x240] sm:$0xff] }
 0x143   :  { %899 = vmatpush.msrb.mxu2 %v503_v32  ;;  %922 = vmatpush.msrb.mxu3 %v567_v33  ;;  %v1081_v39 = vrot.slane %v2249_v34, 1  ;;  %v1084_v40 = vrot.slane %v2251_v35, 1  ;;  %v464_v22 = vld [vmem:[#allocation7 + $0x48] sm:$0xff]  ;;  %v459_v24 = vld [vmem:[#allocation7 + $0x20] sm:$0xff] }
 0x144   :  { %945 = vmatpush.msra.mxu0 %v504_v36  ;;  %968 = vmatpush.msra.mxu1 %v568_v37  ;;  %v528_v23 = vld [vmem:[#allocation7 + $0x248] sm:$0xff]  ;;  %v523_v25 = vld [vmem:[#allocation7 + $0x220] sm:$0xff]  ;;  %v517_v36 = vld [vmem:[#allocation7 + $0x1f0] sm:$0xff] }
 0x145   :  { %731 = vmatmul.f32.gmra.mxu2 %v2249_v34  ;;  %754 = vmatmul.f32.gmra.mxu3 %v2251_v35  ;;  %v2261_v45 = vsel %vm349_vm12, %v1080_v38, %v1081_v39  ;;  %v2269_v52 = vsel %vm349_vm12, %v1083_v46, %v1084_v40  ;;  %v460_v28 = vld [vmem:[#allocation7 + $0x28] sm:$0xff]  ;;  %v455_v30 = vld [vmem:[#allocation7] sm:$0xff]  ;;  %v581_v37 = vld [vmem:[#allocation7 + $0x3f0] sm:$0xff] }
 0x146   :  { %777 = vmatmul.f32.gmra.mxu0 %v2249_v34  ;;  %800 = vmatmul.f32.gmra.mxu1 %v2251_v35  ;;  %v524_v29 = vld [vmem:[#allocation7 + $0x228] sm:$0xff]  ;;  %v519_v31 = vld [vmem:[#allocation7 + $0x200] sm:$0xff]  ;;  %v518_v38 = vld [vmem:[#allocation7 + $0x1f8] sm:$0xff] }
 0x147   :  { %900 = vmatpush.msrb.mxu2 %v499_v41  ;;  %923 = vmatpush.msrb.mxu3 %v563_v42  ;;  %v456_v32 = vld [vmem:[#allocation7 + $0x8] sm:$0xff]  ;;  %v582_v41 = vld [vmem:[#allocation7 + $0x3f8] sm:$0xff]  ;;  %v577_v46 = vld [vmem:[#allocation7 + $0x3d0] sm:$0xff] }
 0x148   :  { %946 = vmatpush.msra.mxu0 %v500_v43  ;;  %969 = vmatpush.msra.mxu1 %v564_v44  ;;  %v520_v33 = vld [vmem:[#allocation7 + $0x208] sm:$0xff]  ;;  %v513_v44 = vld [vmem:[#allocation7 + $0x1d0] sm:$0xff] }
 0x149   :  { %901 = vmatpush.msrb.mxu2 %v495_v47  ;;  %924 = vmatpush.msrb.mxu3 %v559_v48  ;;  %v514_v47 = vld [vmem:[#allocation7 + $0x1d8] sm:$0xff] }
 0x14a   :  { %947 = vmatpush.msra.mxu0 %v496_v50  ;;  %970 = vmatpush.msra.mxu1 %v560_v51  ;;  %v578_v48 = vld [vmem:[#allocation7 + $0x3d8] sm:$0xff]  ;;  %v509_v50 = vld [vmem:[#allocation7 + $0x1b0] sm:$0xff] }
 0x14b   :  { %902 = vmatpush.msrb.mxu2 %v491_v53  ;;  %925 = vmatpush.msrb.mxu3 %v555_v54  ;;  %v573_v51 = vld [vmem:[#allocation7 + $0x3b0] sm:$0xff]  ;;  %v441_v53 = vrot.slane %v2249_v34, 7  ;;  %v443_v54 = vrot.slane %v2251_v35, 7 }
 0x14c   :  { %948 = vmatpush.msra.mxu0 %v492_v55  ;;  %971 = vmatpush.msra.mxu1 %v556_v56  ;;  %v510_v55 = vld [vmem:[#allocation7 + $0x1b8] sm:$0xff] }
 0x14d   :  { %903 = vmatpush.msrb.mxu2 %v487_v57  ;;  %926 = vmatpush.msrb.mxu3 %v551_v58  ;;  %v574_v56 = vld [vmem:[#allocation7 + $0x3b8] sm:$0xff]  ;;  %v505_v57 = vld [vmem:[#allocation7 + $0x190] sm:$0xff] }
 0x14e   :  { %949 = vmatpush.msra.mxu0 %v488_v59  ;;  %972 = vmatpush.msra.mxu1 %v552_v60  ;;  %v569_v58 = vld [vmem:[#allocation7 + $0x390] sm:$0xff]  ;;  %v506_v59 = vld [vmem:[#allocation7 + $0x198] sm:$0xff] }
 0x14f   :  { %820 = vmatmul.f32.vlgmr.msra.gmra.mxu2 %v2241_v11  ;;  %843 = vmatmul.f32.vlgmr.msra.gmra.mxu3 %v2243_v12  ;;  %v570_v60 = vld [vmem:[#allocation7 + $0x398] sm:$0xff] }
 0x150   :  { %866 = vmatmul.f32.vlgmr.msrb.gmra.mxu0 %v2241_v11  ;;  %889 = vmatmul.f32.vlgmr.msrb.gmra.mxu1 %v2243_v12  ;;  %v449_v11 = vsel %vm224_vm10, 0.0, %v439_v26  ;;  %v450_v12 = vsel %vm224_vm10, 0.0, %v440_v27 }
 0x151   :  { %904 = vmatpush.msrb.mxu2 %v483_v61  ;;  %927 = vmatpush.msrb.mxu3 %v547_v62  ;;  %v2284_v42 = vmul.f32 %v2210_v49, %v449_v11  ;;  %v2287_v43 = vmul.f32 %v2210_v49, %v450_v12  ;;  %v501_v61 = vld [vmem:[#allocation7 + $0x170] sm:$0xff]  ;;  %v470_v12 = vld [vmem:[#allocation7 + $0x78] sm:$0xff] }
 0x152   :  { %950 = vmatpush.msra.mxu0 %v484_v63  ;;  %973 = vmatpush.msra.mxu1 %v548_v0  ;;  %v565_v62 = vld [vmem:[#allocation7 + $0x370] sm:$0xff]  ;;  %v442_v63 = vsel %vm224_vm10, %v439_v26, %v441_v53  ;;  %v444_v0 = vsel %vm224_vm10, %v440_v27, %v443_v54  ;;  %v546_v26 = vld [vmem:[#allocation7 + $0x2d8] sm:$0xff] }
 0x153   :  { %905 = vmatpush.msrb.mxu2 %v479_v1  ;;  %928 = vmatpush.msrb.mxu3 %v543_v3  ;;  %v502_v1 = vld [vmem:[#allocation7 + $0x178] sm:$0xff]  ;;  %v477_v27 = vld [vmem:[#allocation7 + $0xb0] sm:$0xff] }
 0x154   :  { %951 = vmatpush.msra.mxu0 %v480_v4  ;;  %974 = vmatpush.msra.mxu1 %v544_v5  ;;  %v566_v3 = vld [vmem:[#allocation7 + $0x378] sm:$0xff]  ;;  %v2298_v4 = vmul.f32 %v2210_v49, %v442_v63  ;;  %v2301_v5 = vmul.f32 %v2210_v49, %v444_v0  ;;  %v533_v11 = vld [vmem:[#allocation7 + $0x270] sm:$0xff]  ;;  %v1217_v63 = vld [vmem:[#allocation7 + $0xbc0] sm:$0xff] }
 0x155   :  { %906 = vmatpush.msrb.mxu2 %v475_v6  ;;  %929 = vmatpush.msrb.mxu3 %v539_v7  ;;  %v497_v6 = vld [vmem:[#allocation7 + $0x150] sm:$0xff]  ;;  %v494_v49 = vld [vmem:[#allocation7 + $0x138] sm:$0xff]  ;;  %v1154_v0 = vld [vmem:[#allocation7 + $0x9c8] sm:$0xff] }
 0x156   :  { %952 = vmatpush.msra.mxu0 %v476_v8  ;;  %975 = vmatpush.msra.mxu1 %v540_v9  ;;  %v561_v7 = vld [vmem:[#allocation7 + $0x350] sm:$0xff]  ;;  %v498_v8 = vld [vmem:[#allocation7 + $0x158] sm:$0xff] }
 0x157   :  { %907 = vmatpush.msrb.mxu2 %v471_v13  ;;  %930 = vmatpush.msrb.mxu3 %v535_v14  ;;  %v562_v9 = vld [vmem:[#allocation7 + $0x358] sm:$0xff]  ;;  %v493_v13 = vld [vmem:[#allocation7 + $0x130] sm:$0xff] }
 0x158   :  { %953 = vmatpush.msra.mxu0 %v472_v15  ;;  %976 = vmatpush.msra.mxu1 %v536_v16  ;;  %v557_v14 = vld [vmem:[#allocation7 + $0x330] sm:$0xff]  ;;  %v558_v15 = vld [vmem:[#allocation7 + $0x338] sm:$0xff] }
 0x159   :  { %823 = vmatmul.f32.gmra.mxu2 %v2249_v34  ;;  %846 = vmatmul.f32.gmra.mxu3 %v2251_v35  ;;  %v489_v16 = vld [vmem:[#allocation7 + $0x110] sm:$0xff]  ;;  %v526_v53 = vld [vmem:[#allocation7 + $0x238] sm:$0xff] }
 0x15a   :  { %869 = vmatmul.f32.gmra.mxu0 %v2249_v34  ;;  %892 = vmatmul.f32.gmra.mxu1 %v2251_v35  ;;  %v457_v54 = vld [vmem:[#allocation7 + $0x10] sm:$0xff] }
 0x15b   :  { %908 = vmatpush.msrb.mxu2 %v467_v2  ;;  %931 = vmatpush.msrb.mxu3 %v531_v17  ;;  %v553_v2 = vld [vmem:[#allocation7 + $0x310] sm:$0xff]  ;;  %v490_v17 = vld [vmem:[#allocation7 + $0x118] sm:$0xff] }
 0x15c   :  { %954 = vmatpush.msra.mxu0 %v468_v18  ;;  %977 = vmatpush.msra.mxu1 %v532_v19  ;;  %v554_v18 = vld [vmem:[#allocation7 + $0x318] sm:$0xff]  ;;  %v485_v19 = vld [vmem:[#allocation7 + $0xf0] sm:$0xff] }
 0x15d   :  { %909 = vmatpush.msrb.mxu2 %v463_v20  ;;  %932 = vmatpush.msrb.mxu3 %v527_v21  ;;  %v549_v20 = vld [vmem:[#allocation7 + $0x2f0] sm:$0xff]  ;;  %v486_v21 = vld [vmem:[#allocation7 + $0xf8] sm:$0xff] }
 0x15e   :  { %955 = vmatpush.msra.mxu0 %v464_v22  ;;  %978 = vmatpush.msra.mxu1 %v528_v23  ;;  %v550_v22 = vld [vmem:[#allocation7 + $0x2f8] sm:$0xff]  ;;  %v481_v23 = vld [vmem:[#allocation7 + $0xd0] sm:$0xff] }
 0x15f   :  { %910 = vmatpush.msrb.mxu2 %v459_v24  ;;  %933 = vmatpush.msrb.mxu3 %v523_v25  ;;  %v545_v24 = vld [vmem:[#allocation7 + $0x2d0] sm:$0xff]  ;;  %v482_v25 = vld [vmem:[#allocation7 + $0xd8] sm:$0xff] }
 0x160   :  { %956 = vmatpush.msra.mxu0 %v460_v28  ;;  %979 = vmatpush.msra.mxu1 %v524_v29  ;;  %v541_v28 = vld [vmem:[#allocation7 + $0x2b0] sm:$0xff]  ;;  %v478_v29 = vld [vmem:[#allocation7 + $0xb8] sm:$0xff] }
 0x161   :  { %911 = vmatpush.msrb.mxu2 %v455_v30  ;;  %934 = vmatpush.msrb.mxu3 %v519_v31  ;;  %v542_v30 = vld [vmem:[#allocation7 + $0x2b8] sm:$0xff]  ;;  %v473_v31 = vld [vmem:[#allocation7 + $0x90] sm:$0xff] }
 0x162   :  { %957 = vmatpush.msra.mxu0 %v456_v32  ;;  %980 = vmatpush.msra.mxu1 %v520_v33  ;;  %v537_v32 = vld [vmem:[#allocation7 + $0x290] sm:$0xff]  ;;  %v474_v33 = vld [vmem:[#allocation7 + $0x98] sm:$0xff] }
 0x163   :  { %988 = vmatpush.msra.mxu2 %v517_v36  ;;  %1011 = vmatpush.msra.mxu3 %v581_v37  ;;  %v538_v36 = vld [vmem:[#allocation7 + $0x298] sm:$0xff]  ;;  %v469_v37 = vld [vmem:[#allocation7 + $0x70] sm:$0xff] }
 0x164   :  { %1034 = vmatpush.msrb.mxu0 %v518_v38  ;;  %1057 = vmatpush.msrb.mxu1 %v582_v41  ;;  %v534_v38 = vld [vmem:[#allocation7 + $0x278] sm:$0xff]  ;;  %v465_v41 = vld [vmem:[#allocation7 + $0x50] sm:$0xff] }
 0x165   :  { %912 = vmatmul.f32.vlgmr.msrb.gmra.mxu2 %v2284_v42  ;;  %935 = vmatmul.f32.vlgmr.msrb.gmra.mxu3 %v2287_v43  ;;  %v1143_v34 = vld [vmem:[#allocation7 + $0x970] sm:$0xff] }
 0x166   :  { %958 = vmatmul.f32.vlgmr.msra.gmra.mxu0 %v2284_v42  ;;  %981 = vmatmul.f32.vlgmr.msra.gmra.mxu1 %v2287_v43  ;;  %v1207_v35 = vld [vmem:[#allocation7 + $0xb70] sm:$0xff] }
 0x167   :  { %989 = vmatpush.msra.mxu2 %v513_v44  ;;  %1012 = vmatpush.msra.mxu3 %v577_v46  ;;  %v529_v44 = vld [vmem:[#allocation7 + $0x250] sm:$0xff]  ;;  %v466_v46 = vld [vmem:[#allocation7 + $0x58] sm:$0xff] }
 0x168   :  { %1035 = vmatpush.msrb.mxu0 %v514_v47  ;;  %1058 = vmatpush.msrb.mxu1 %v578_v48  ;;  %v530_v47 = vld [vmem:[#allocation7 + $0x258] sm:$0xff]  ;;  %v461_v48 = vld [vmem:[#allocation7 + $0x30] sm:$0xff] }
 0x169   :  { %990 = vmatpush.msra.mxu2 %v509_v50  ;;  %1013 = vmatpush.msra.mxu3 %v573_v51  ;;  %v525_v50 = vld [vmem:[#allocation7 + $0x230] sm:$0xff]  ;;  %v462_v51 = vld [vmem:[#allocation7 + $0x38] sm:$0xff] }
 0x16a   :  { %1036 = vmatpush.msrb.mxu0 %v510_v55  ;;  %1059 = vmatpush.msrb.mxu1 %v574_v56  ;;  %v521_v55 = vld [vmem:[#allocation7 + $0x210] sm:$0xff]  ;;  %v458_v56 = vld [vmem:[#allocation7 + $0x18] sm:$0xff] }
 0x16b   :  { %991 = vmatpush.msra.mxu2 %v505_v57  ;;  %1014 = vmatpush.msra.mxu3 %v569_v58  ;;  %v522_v57 = vld [vmem:[#allocation7 + $0x218] sm:$0xff]  ;;  %v1157_v58 = vld [vmem:[#allocation7 + $0x9e0] sm:$0xff] }
 0x16c   :  { %1037 = vmatpush.msrb.mxu0 %v506_v59  ;;  %1060 = vmatpush.msrb.mxu1 %v570_v60  ;;  %v1221_v59 = vld [vmem:[#allocation7 + $0xbe0] sm:$0xff]  ;;  %v1158_v60 = vld [vmem:[#allocation7 + $0x9e8] sm:$0xff] }
 0x16d   :  { %992 = vmatpush.msra.mxu2 %v501_v61  ;;  %1015 = vmatpush.msra.mxu3 %v565_v62  ;;  %v1222_v61 = vld [vmem:[#allocation7 + $0xbe8] sm:$0xff]  ;;  %v1153_v62 = vld [vmem:[#allocation7 + $0x9c0] sm:$0xff] }
 0x16e   :  { %1038 = vmatpush.msrb.mxu0 %v502_v1  ;;  %1061 = vmatpush.msrb.mxu1 %v566_v3  ;;  %v1218_v1 = vld [vmem:[#allocation7 + $0xbc8] sm:$0xff]  ;;  %v1149_v3 = vld [vmem:[#allocation7 + $0x9a0] sm:$0xff] }
 0x16f   :  { %915 = vmatmul.f32.gmra.mxu2 %v2298_v4  ;;  %938 = vmatmul.f32.gmra.mxu3 %v2301_v5 }
 0x170   :  { %961 = vmatmul.f32.gmra.mxu0 %v2298_v4  ;;  %984 = vmatmul.f32.gmra.mxu1 %v2301_v5 }
 0x171   :  { %993 = vmatpush.msra.mxu2 %v497_v6  ;;  %1016 = vmatpush.msra.mxu3 %v561_v7  ;;  %v1213_v6 = vld [vmem:[#allocation7 + $0xba0] sm:$0xff]  ;;  %v1150_v7 = vld [vmem:[#allocation7 + $0x9a8] sm:$0xff] }
 0x172   :  { %1039 = vmatpush.msrb.mxu0 %v498_v8  ;;  %1062 = vmatpush.msrb.mxu1 %v562_v9  ;;  %v1214_v8 = vld [vmem:[#allocation7 + $0xba8] sm:$0xff]  ;;  %v1145_v9 = vld [vmem:[#allocation7 + $0x980] sm:$0xff] }
 0x173   :  { %994 = vmatpush.msra.mxu2 %v493_v13  ;;  %1017 = vmatpush.msra.mxu3 %v557_v14  ;;  %v1210_v13 = vld [vmem:[#allocation7 + $0xb88] sm:$0xff]  ;;  %v1141_v14 = vld [vmem:[#allocation7 + $0x960] sm:$0xff] }
 0x174   :  { %1040 = vmatpush.msrb.mxu0 %v494_v49  ;;  %1063 = vmatpush.msrb.mxu1 %v558_v15  ;;  %v1205_v49 = vld [vmem:[#allocation7 + $0xb60] sm:$0xff]  ;;  %v1142_v15 = vld [vmem:[#allocation7 + $0x968] sm:$0xff] }
 0x175   :  { %995 = vmatpush.msra.mxu2 %v489_v16  ;;  %1018 = vmatpush.msra.mxu3 %v553_v2  ;;  %v1206_v16 = vld [vmem:[#allocation7 + $0xb68] sm:$0xff]  ;;  %v1137_v2 = vld [vmem:[#allocation7 + $0x940] sm:$0xff] }
 0x176   :  { %1041 = vmatpush.msrb.mxu0 %v490_v17  ;;  %1064 = vmatpush.msrb.mxu1 %v554_v18  ;;  %v1201_v17 = vld [vmem:[#allocation7 + $0xb40] sm:$0xff]  ;;  %v1138_v18 = vld [vmem:[#allocation7 + $0x948] sm:$0xff] }
 0x177   :  { %996 = vmatpush.msra.mxu2 %v485_v19  ;;  %1019 = vmatpush.msra.mxu3 %v549_v20  ;;  %v1202_v19 = vld [vmem:[#allocation7 + $0xb48] sm:$0xff]  ;;  %v1133_v20 = vld [vmem:[#allocation7 + $0x920] sm:$0xff] }
 0x178   :  { %1042 = vmatpush.msrb.mxu0 %v486_v21  ;;  %1065 = vmatpush.msrb.mxu1 %v550_v22  ;;  %v1197_v21 = vld [vmem:[#allocation7 + $0xb20] sm:$0xff]  ;;  %v1134_v22 = vld [vmem:[#allocation7 + $0x928] sm:$0xff] }
 0x179   :  { %997 = vmatpush.msra.mxu2 %v481_v23  ;;  %1020 = vmatpush.msra.mxu3 %v545_v24  ;;  %v1198_v23 = vld [vmem:[#allocation7 + $0xb28] sm:$0xff]  ;;  %v1129_v24 = vld [vmem:[#allocation7 + $0x900] sm:$0xff] }
 0x17a   :  { %1043 = vmatpush.msrb.mxu0 %v482_v25  ;;  %1066 = vmatpush.msrb.mxu1 %v546_v26  ;;  %v1194_v25 = vld [vmem:[#allocation7 + $0xb08] sm:$0xff]  ;;  %v1125_v26 = vld [vmem:[#allocation7 + $0x8e0] sm:$0xff] }
 0x17b   :  { %998 = vmatpush.msra.mxu2 %v477_v27  ;;  %1021 = vmatpush.msra.mxu3 %v541_v28  ;;  %v1189_v27 = vld [vmem:[#allocation7 + $0xae0] sm:$0xff]  ;;  %v1126_v28 = vld [vmem:[#allocation7 + $0x8e8] sm:$0xff] }
 0x17c   :  { %1044 = vmatpush.msrb.mxu0 %v478_v29  ;;  %1067 = vmatpush.msrb.mxu1 %v542_v30  ;;  %v1190_v29 = vld [vmem:[#allocation7 + $0xae8] sm:$0xff]  ;;  %v1121_v30 = vld [vmem:[#allocation7 + $0x8c0] sm:$0xff] }
 0x17d   :  { %999 = vmatpush.msra.mxu2 %v473_v31  ;;  %1022 = vmatpush.msra.mxu3 %v537_v32  ;;  %v1185_v31 = vld [vmem:[#allocation7 + $0xac0] sm:$0xff]  ;;  %v1122_v32 = vld [vmem:[#allocation7 + $0x8c8] sm:$0xff] }
 0x17e   :  { %1045 = vmatpush.msrb.mxu0 %v474_v33  ;;  %1068 = vmatpush.msrb.mxu1 %v538_v36  ;;  %v1186_v33 = vld [vmem:[#allocation7 + $0xac8] sm:$0xff]  ;;  %v1117_v36 = vld [vmem:[#allocation7 + $0x8a0] sm:$0xff] }
 0x17f   :  { %1000 = vmatpush.msra.mxu2 %v469_v37  ;;  %1023 = vmatpush.msra.mxu3 %v533_v11  ;;  %v1181_v37 = vld [vmem:[#allocation7 + $0xaa0] sm:$0xff]  ;;  %v1118_v11 = vld [vmem:[#allocation7 + $0x8a8] sm:$0xff] }
 0x180   :  { %1046 = vmatpush.msrb.mxu0 %v470_v12  ;;  %1069 = vmatpush.msrb.mxu1 %v534_v38  ;;  %v1182_v12 = vld [vmem:[#allocation7 + $0xaa8] sm:$0xff]  ;;  %v1113_v38 = vld [vmem:[#allocation7 + $0x880] sm:$0xff] }
 0x181   :  { %1001 = vmatpush.msra.mxu2 %v465_v41  ;;  %1024 = vmatpush.msra.mxu3 %v529_v44  ;;  %v1177_v41 = vld [vmem:[#allocation7 + $0xa80] sm:$0xff]  ;;  %v1114_v44 = vld [vmem:[#allocation7 + $0x888] sm:$0xff] }
 0x182   :  { %1047 = vmatpush.msrb.mxu0 %v466_v46  ;;  %1070 = vmatpush.msrb.mxu1 %v530_v47  ;;  %v1178_v46 = vld [vmem:[#allocation7 + $0xa88] sm:$0xff]  ;;  %v1109_v47 = vld [vmem:[#allocation7 + $0x860] sm:$0xff] }
 0x183   :  { %1002 = vmatpush.msra.mxu2 %v461_v48  ;;  %1025 = vmatpush.msra.mxu3 %v525_v50  ;;  %v1173_v48 = vld [vmem:[#allocation7 + $0xa60] sm:$0xff]  ;;  %v1110_v50 = vld [vmem:[#allocation7 + $0x868] sm:$0xff] }
 0x184   :  { %1048 = vmatpush.msrb.mxu0 %v462_v51  ;;  %1071 = vmatpush.msrb.mxu1 %v526_v53  ;;  %v1174_v51 = vld [vmem:[#allocation7 + $0xa68] sm:$0xff]  ;;  %v1105_v53 = vld [vmem:[#allocation7 + $0x840] sm:$0xff] }
 0x185   :  { %1003 = vmatpush.msra.mxu2 %v457_v54  ;;  %1026 = vmatpush.msra.mxu3 %v521_v55  ;;  %v1169_v54 = vld [vmem:[#allocation7 + $0xa40] sm:$0xff]  ;;  %v1106_v55 = vld [vmem:[#allocation7 + $0x848] sm:$0xff] }
 0x186   :  { %1049 = vmatpush.msrb.mxu0 %v458_v56  ;;  %1072 = vmatpush.msrb.mxu1 %v522_v57  ;;  %v1170_v56 = vld [vmem:[#allocation7 + $0xa48] sm:$0xff]  ;;  %v1101_v57 = vld [vmem:[#allocation7 + $0x820] sm:$0xff] }
 0x187   :  { %1004 = vmatmul.f32.vlgmr.msra.gmra.mxu2 %v2284_v42  ;;  %1027 = vmatmul.f32.vlgmr.msra.gmra.mxu3 %v2287_v43 }
 0x188   :  { %1050 = vmatmul.f32.vlgmr.msrb.gmra.mxu0 %v2284_v42  ;;  %1073 = vmatmul.f32.vlgmr.msrb.gmra.mxu1 %v2287_v43  ;;  %v1209_v42 = vld [vmem:[#allocation7 + $0xb80] sm:$0xff]  ;;  %v1146_v43 = vld [vmem:[#allocation7 + $0x988] sm:$0xff] }
 0x189   :  { %1225 = vmatpush.msrb.mxu2 %v1157_v58  ;;  %1248 = vmatpush.msrb.mxu3 %v1221_v59  ;;  %v1165_v58 = vld [vmem:[#allocation7 + $0xa20] sm:$0xff]  ;;  %v1102_v59 = vld [vmem:[#allocation7 + $0x828] sm:$0xff] }
 0x18a   :  { %1271 = vmatpush.msra.mxu0 %v1158_v60  ;;  %1294 = vmatpush.msra.mxu1 %v1222_v61  ;;  %v1166_v60 = vld [vmem:[#allocation7 + $0xa28] sm:$0xff]  ;;  %v1097_v61 = vld [vmem:[#allocation7 + $0x800] sm:$0xff] }
 0x18b   :  { %1226 = vmatpush.msrb.mxu2 %v1153_v62  ;;  %1249 = vmatpush.msrb.mxu3 %v1217_v63  ;;  %v1161_v62 = vld [vmem:[#allocation7 + $0xa00] sm:$0xff]  ;;  %v1098_v63 = vld [vmem:[#allocation7 + $0x808] sm:$0xff] }
 0x18c   :  { %1272 = vmatpush.msra.mxu0 %v1154_v0  ;;  %1295 = vmatpush.msra.mxu1 %v1218_v1  ;;  %v1162_v0 = vld [vmem:[#allocation7 + $0xa08] sm:$0xff]  ;;  %v2317_v1 = vmul.f32 %v2229_v10, %v2261_v45  ;;  %v1155_v45 = vld [vmem:[#allocation7 + $0x9d0] sm:$0xff] }
 0x18d   :  { %1227 = vmatpush.msrb.mxu2 %v1149_v3  ;;  %1250 = vmatpush.msrb.mxu3 %v1213_v6  ;;  %v2321_v3 = vmul.f32 %v2229_v10, %v2269_v52  ;;  %v1159_v6 = vld [vmem:[#allocation7 + $0x9f0] sm:$0xff]  ;;  %v1156_v52 = vld [vmem:[#allocation7 + $0x9d8] sm:$0xff] }
 0x18e   :  { %1273 = vmatpush.msra.mxu0 %v1150_v7  ;;  %1296 = vmatpush.msra.mxu1 %v1214_v8  ;;  %v1223_v7 = vld [vmem:[#allocation7 + $0xbf0] sm:$0xff]  ;;  %v1160_v8 = vld [vmem:[#allocation7 + $0x9f8] sm:$0xff] }
 0x18f   :  { %1228 = vmatpush.msrb.mxu2 %v1145_v9  ;;  %1251 = vmatpush.msrb.mxu3 %v1209_v42  ;;  %v1224_v9 = vld [vmem:[#allocation7 + $0xbf8] sm:$0xff]  ;;  %v1219_v42 = vld [vmem:[#allocation7 + $0xbd0] sm:$0xff] }
 0x190   :  { %1274 = vmatpush.msra.mxu0 %v1146_v43  ;;  %1297 = vmatpush.msra.mxu1 %v1210_v13  ;;  %v1220_v43 = vld [vmem:[#allocation7 + $0xbd8] sm:$0xff]  ;;  %v1151_v13 = vld [vmem:[#allocation7 + $0x9b0] sm:$0xff] }
 0x191   :  { %1007 = vmatmul.f32.gmra.mxu2 %v2298_v4  ;;  %1030 = vmatmul.f32.gmra.mxu3 %v2301_v5 }
 0x192   :  { %1053 = vmatmul.f32.gmra.mxu0 %v2298_v4  ;;  %1076 = vmatmul.f32.gmra.mxu1 %v2301_v5  ;;  %v1193_v4 = vld [vmem:[#allocation7 + $0xb00] sm:$0xff]  ;;  %v1130_v5 = vld [vmem:[#allocation7 + $0x908] sm:$0xff] }
 0x193   :  { %1229 = vmatpush.msrb.mxu2 %v1141_v14  ;;  %1252 = vmatpush.msrb.mxu3 %v1205_v49  ;;  %v1215_v14 = vld [vmem:[#allocation7 + $0xbb0] sm:$0xff]  ;;  %v1152_v49 = vld [vmem:[#allocation7 + $0x9b8] sm:$0xff] }
 0x194   :  { %1275 = vmatpush.msra.mxu0 %v1142_v15  ;;  %1298 = vmatpush.msra.mxu1 %v1206_v16  ;;  %v1216_v15 = vld [vmem:[#allocation7 + $0xbb8] sm:$0xff]  ;;  %v1147_v16 = vld [vmem:[#allocation7 + $0x990] sm:$0xff] }
 0x195   :  { %1230 = vmatpush.msrb.mxu2 %v1137_v2  ;;  %1253 = vmatpush.msrb.mxu3 %v1201_v17  ;;  %v1211_v2 = vld [vmem:[#allocation7 + $0xb90] sm:$0xff]  ;;  %v1090_v17 = vsel %vm349_vm12, %v1081_v39, 0.0  ;;  %v1144_v39 = vld [vmem:[#allocation7 + $0x978] sm:$0xff] }
 0x196   :  { %1276 = vmatpush.msra.mxu0 %v1138_v18  ;;  %1299 = vmatpush.msra.mxu1 %v1202_v19  ;;  %v1091_v18 = vsel %vm349_vm12, %v1084_v40, 0.0  ;;  %v1148_v19 = vld [vmem:[#allocation7 + $0x998] sm:$0xff] }
 0x197   :  { %1231 = vmatpush.msrb.mxu2 %v1133_v20  ;;  %1254 = vmatpush.msrb.mxu3 %v1197_v21  ;;  %v1212_v20 = vld [vmem:[#allocation7 + $0xb98] sm:$0xff]  ;;  %v2334_v21 = vmul.f32 %v2229_v10, %v1090_v17 }
 0x198   :  { %1277 = vmatpush.msra.mxu0 %v1134_v22  ;;  %1300 = vmatpush.msra.mxu1 %v1198_v23  ;;  %v2337_v22 = vmul.f32 %v2229_v10, %v1091_v18  ;;  %v1208_v40 = vld [vmem:[#allocation7 + $0xb78] sm:$0xff]  ;;  %v1139_v23 = vld [vmem:[#allocation7 + $0x950] sm:$0xff] }
 0x199   :  { %1232 = vmatpush.msrb.mxu2 %v1129_v24  ;;  %1255 = vmatpush.msrb.mxu3 %v1193_v4  ;;  %v1203_v24 = vld [vmem:[#allocation7 + $0xb50] sm:$0xff]  ;;  %v1140_v10 = vld [vmem:[#allocation7 + $0x958] sm:$0xff] }
 0x19a   :  { %1278 = vmatpush.msra.mxu0 %v1130_v5  ;;  %1301 = vmatpush.msra.mxu1 %v1194_v25  ;;  %v1204_v4 = vld [vmem:[#allocation7 + $0xb58] sm:$0xff]  ;;  %v1135_v5 = vld [vmem:[#allocation7 + $0x930] sm:$0xff] }
 0x19b   :  { %1233 = vmatpush.msrb.mxu2 %v1125_v26  ;;  %1256 = vmatpush.msrb.mxu3 %v1189_v27  ;;  %v1199_v25 = vld [vmem:[#allocation7 + $0xb30] sm:$0xff]  ;;  %v1136_v26 = vld [vmem:[#allocation7 + $0x938] sm:$0xff] }
 0x19c   :  { %1279 = vmatpush.msra.mxu0 %v1126_v28  ;;  %1302 = vmatpush.msra.mxu1 %v1190_v29  ;;  %v1200_v27 = vld [vmem:[#allocation7 + $0xb38] sm:$0xff] }
 0x19d   :  { %1234 = vmatpush.msrb.mxu2 %v1121_v30  ;;  %1257 = vmatpush.msrb.mxu3 %v1185_v31  ;;  %v1131_v30 = vld [vmem:[#allocation7 + $0x910] sm:$0xff] }
 0x19e   :  { %1280 = vmatpush.msra.mxu0 %v1122_v32  ;;  %1303 = vmatpush.msra.mxu1 %v1186_v33  ;;  %v1195_v31 = vld [vmem:[#allocation7 + $0xb10] sm:$0xff]  ;;  %v1132_v32 = vld [vmem:[#allocation7 + $0x918] sm:$0xff] }
 0x19f   :  { %1235 = vmatpush.msrb.mxu2 %v1117_v36  ;;  %1258 = vmatpush.msrb.mxu3 %v1181_v37  ;;  %v1196_v33 = vld [vmem:[#allocation7 + $0xb18] sm:$0xff]  ;;  %v1127_v36 = vld [vmem:[#allocation7 + $0x8f0] sm:$0xff] }
 0x1a0   :  { %1281 = vmatpush.msra.mxu0 %v1118_v11  ;;  %1304 = vmatpush.msra.mxu1 %v1182_v12  ;;  %v1191_v37 = vld [vmem:[#allocation7 + $0xaf0] sm:$0xff]  ;;  %v1128_v11 = vld [vmem:[#allocation7 + $0x8f8] sm:$0xff] }
 0x1a1   :  { %1236 = vmatpush.msrb.mxu2 %v1113_v38  ;;  %1259 = vmatpush.msrb.mxu3 %v1177_v41  ;;  %v1192_v12 = vld [vmem:[#allocation7 + $0xaf8] sm:$0xff]  ;;  %v1123_v38 = vld [vmem:[#allocation7 + $0x8d0] sm:$0xff] }
 0x1a2   :  { %1282 = vmatpush.msra.mxu0 %v1114_v44  ;;  %1305 = vmatpush.msra.mxu1 %v1178_v46  ;;  %v1187_v41 = vld [vmem:[#allocation7 + $0xad0] sm:$0xff] }
 0x1a3   :  { %1237 = vmatpush.msrb.mxu2 %v1109_v47  ;;  %1260 = vmatpush.msrb.mxu3 %v1173_v48  ;;  %v1124_v47 = vld [vmem:[#allocation7 + $0x8d8] sm:$0xff] }
 0x1a4   :  { %1283 = vmatpush.msra.mxu0 %v1110_v50  ;;  %1306 = vmatpush.msra.mxu1 %v1174_v51  ;;  %v1188_v48 = vld [vmem:[#allocation7 + $0xad8] sm:$0xff]  ;;  %v1119_v50 = vld [vmem:[#allocation7 + $0x8b0] sm:$0xff] }
 0x1a5   :  { %1238 = vmatpush.msrb.mxu2 %v1105_v53  ;;  %1261 = vmatpush.msrb.mxu3 %v1169_v54  ;;  %v1183_v51 = vld [vmem:[#allocation7 + $0xab0] sm:$0xff]  ;;  %v1120_v53 = vld [vmem:[#allocation7 + $0x8b8] sm:$0xff] }
 0x1a6   :  { %1284 = vmatpush.msra.mxu0 %v1106_v55  ;;  %1307 = vmatpush.msra.mxu1 %v1170_v56  ;;  %v1184_v54 = vld [vmem:[#allocation7 + $0xab8] sm:$0xff]  ;;  %v1115_v55 = vld [vmem:[#allocation7 + $0x890] sm:$0xff] }
 0x1a7   :  { %1239 = vmatpush.msrb.mxu2 %v1101_v57  ;;  %1262 = vmatpush.msrb.mxu3 %v1165_v58  ;;  %v1179_v56 = vld [vmem:[#allocation7 + $0xa90] sm:$0xff]  ;;  %v1116_v57 = vld [vmem:[#allocation7 + $0x898] sm:$0xff] }
 0x1a8   :  { %1285 = vmatpush.msra.mxu0 %v1102_v59  ;;  %1308 = vmatpush.msra.mxu1 %v1166_v60  ;;  %v1180_v58 = vld [vmem:[#allocation7 + $0xa98] sm:$0xff] }
 0x1a9   :  { %1240 = vmatpush.msrb.mxu2 %v1097_v61  ;;  %1263 = vmatpush.msrb.mxu3 %v1161_v62  ;;  %v1111_v61 = vld [vmem:[#allocation7 + $0x870] sm:$0xff] }
 0x1aa   :  { %1286 = vmatpush.msra.mxu0 %v1098_v63  ;;  %1309 = vmatpush.msra.mxu1 %v1162_v0  ;;  %v1175_v62 = vld [vmem:[#allocation7 + $0xa70] sm:$0xff]  ;;  %v1112_v63 = vld [vmem:[#allocation7 + $0x878] sm:$0xff] }
 0x1ab   :  { %1241 = vmatmul.f32.vlgmr.msrb.gmra.mxu2 %v2317_v1  ;;  %1264 = vmatmul.f32.vlgmr.msrb.gmra.mxu3 %v2321_v3  ;;  %v1176_v0 = vld [vmem:[#allocation7 + $0xa78] sm:$0xff] }
 0x1ac   :  { %1287 = vmatmul.f32.vlgmr.msra.gmra.mxu0 %v2317_v1  ;;  %1310 = vmatmul.f32.vlgmr.msra.gmra.mxu1 %v2321_v3 }
 0x1ad   :  { %1317 = vmatpush.msra.mxu2 %v1159_v6  ;;  %1340 = vmatpush.msra.mxu3 %v1223_v7  ;;  %v1107_v6 = vld [vmem:[#allocation7 + $0x850] sm:$0xff] }
 0x1ae   :  { %1363 = vmatpush.msrb.mxu0 %v1160_v8  ;;  %1386 = vmatpush.msrb.mxu1 %v1224_v9  ;;  %v1171_v7 = vld [vmem:[#allocation7 + $0xa50] sm:$0xff]  ;;  %v1108_v8 = vld [vmem:[#allocation7 + $0x858] sm:$0xff] }
 0x1af   :  { %1318 = vmatpush.msra.mxu2 %v1155_v45  ;;  %1341 = vmatpush.msra.mxu3 %v1219_v42  ;;  %v1172_v9 = vld [vmem:[#allocation7 + $0xa58] sm:$0xff]  ;;  %v1103_v45 = vld [vmem:[#allocation7 + $0x830] sm:$0xff] }
 0x1b0   :  { %1364 = vmatpush.msrb.mxu0 %v1156_v52  ;;  %1387 = vmatpush.msrb.mxu1 %v1220_v43  ;;  %v1167_v42 = vld [vmem:[#allocation7 + $0xa30] sm:$0xff] }
 0x1b1   :  { %1319 = vmatpush.msra.mxu2 %v1151_v13  ;;  %1342 = vmatpush.msra.mxu3 %v1215_v14  ;;  %v1104_v13 = vld [vmem:[#allocation7 + $0x838] sm:$0xff] }
 0x1b2   :  { %1365 = vmatpush.msrb.mxu0 %v1152_v49  ;;  %1388 = vmatpush.msrb.mxu1 %v1216_v15  ;;  %v1168_v14 = vld [vmem:[#allocation7 + $0xa38] sm:$0xff]  ;;  %v1099_v49 = vld [vmem:[#allocation7 + $0x810] sm:$0xff] }
 0x1b3   :  { %1320 = vmatpush.msra.mxu2 %v1147_v16  ;;  %1343 = vmatpush.msra.mxu3 %v1211_v2  ;;  %v1163_v15 = vld [vmem:[#allocation7 + $0xa10] sm:$0xff]  ;;  %v1100_v16 = vld [vmem:[#allocation7 + $0x818] sm:$0xff] }
 0x1b4   :  { %1366 = vmatpush.msrb.mxu0 %v1148_v19  ;;  %1389 = vmatpush.msrb.mxu1 %v1212_v20  ;;  %v1164_v2 = vld [vmem:[#allocation7 + $0xa18] sm:$0xff] }
 0x1b5   :  { %1244 = vmatmul.f32.gmra.mxu2 %v2334_v21  ;;  %1267 = vmatmul.f32.gmra.mxu3 %v2337_v22 }
 0x1b6   :  { %1290 = vmatmul.f32.gmra.mxu0 %v2334_v21  ;;  %1313 = vmatmul.f32.gmra.mxu1 %v2337_v22 }
 0x1b7   :  { %1321 = vmatpush.msra.mxu2 %v1143_v34  ;;  %1344 = vmatpush.msra.mxu3 %v1207_v35 }
 0x1b8   :  { %1367 = vmatpush.msrb.mxu0 %v1144_v39  ;;  %1390 = vmatpush.msrb.mxu1 %v1208_v40 }
 0x1b9   :  { %1322 = vmatpush.msra.mxu2 %v1139_v23  ;;  %1345 = vmatpush.msra.mxu3 %v1203_v24  ;;  %v2343_v28 = vpop.f32.mrf.mxu0  ;;  %v2345_v29 = vpop.f32.mrf.mxu1 }
 0x1ba   :  { %1368 = vmatpush.msrb.mxu0 %v1140_v10  ;;  %1391 = vmatpush.msrb.mxu1 %v1204_v4  ;;  %v1473_v4 = vld [vmem:[%s2668_s5 + $0xf0] sm:$0xff] }
 0x1bb   :  { %1323 = vmatpush.msra.mxu2 %v1135_v5  ;;  %1346 = vmatpush.msra.mxu3 %v1199_v25  ;;  %v1471_v5 = vld [vmem:[%s2668_s5 + $0xe0] sm:$0xff]  ;;  %v1457_v25 = vld [vmem:[%s2668_s5 + $0x70] sm:$0xff] }
 0x1bc   :  { %1369 = vmatpush.msrb.mxu0 %v1136_v26  ;;  %1392 = vmatpush.msrb.mxu1 %v1200_v27  ;;  %v1470_v26 = vld [vmem:[%s2668_s5 + $0xd8] sm:$0xff]  ;;  %v1456_v27 = vld [vmem:[%s2668_s5 + $0x68] sm:$0xff] }
 0x1bd   :  { %1324 = vmatpush.msra.mxu2 %v1131_v30  ;;  %1347 = vmatpush.msra.mxu3 %v1195_v31  ;;  %v1469_v30 = vld [vmem:[%s2668_s5 + $0xd0] sm:$0xff]  ;;  %v1455_v31 = vld [vmem:[%s2668_s5 + $0x60] sm:$0xff] }
 0x1be   :  { %1370 = vmatpush.msrb.mxu0 %v1132_v32  ;;  %1393 = vmatpush.msrb.mxu1 %v1196_v33  ;;  %v2347_v44 = vpop.f32.mrf.mxu2  ;;  %v2349_v46 = vpop.f32.mrf.mxu3  ;;  %v1468_v32 = vld [vmem:[%s2668_s5 + $0xc8] sm:$0xff]  ;;  %v1454_v33 = vld [vmem:[%s2668_s5 + $0x58] sm:$0xff] }
 0x1bf   :  { %1325 = vmatpush.msra.mxu2 %v1127_v36  ;;  %1348 = vmatpush.msra.mxu3 %v1191_v37  ;;  %v1467_v36 = vld [vmem:[%s2668_s5 + $0xc0] sm:$0xff]  ;;  %v1453_v37 = vld [vmem:[%s2668_s5 + $0x50] sm:$0xff] }
 0x1c0   :  { %1371 = vmatpush.msrb.mxu0 %v1128_v11  ;;  %1394 = vmatpush.msrb.mxu1 %v1192_v12  ;;  %v1466_v11 = vld [vmem:[%s2668_s5 + $0xb8] sm:$0xff]  ;;  %v1452_v12 = vld [vmem:[%s2668_s5 + $0x48] sm:$0xff] }
 0x1c1   :  { %1326 = vmatpush.msra.mxu2 %v1123_v38  ;;  %1349 = vmatpush.msra.mxu3 %v1187_v41  ;;  %v1465_v38 = vld [vmem:[%s2668_s5 + $0xb0] sm:$0xff]  ;;  %v1451_v41 = vld [vmem:[%s2668_s5 + $0x40] sm:$0xff] }
 0x1c2   :  { %1372 = vmatpush.msrb.mxu0 %v1124_v47  ;;  %1395 = vmatpush.msrb.mxu1 %v1188_v48  ;;  %v1464_v47 = vld [vmem:[%s2668_s5 + $0xa8] sm:$0xff] }
 0x1c3   :  { %1327 = vmatpush.msra.mxu2 %v1119_v50  ;;  %1350 = vmatpush.msra.mxu3 %v1183_v51  ;;  %v2351_v59 = vpop.f32.mrf.mxu0  ;;  %v2353_v60 = vpop.f32.mrf.mxu1 }
 0x1c4   :  { %1373 = vmatpush.msrb.mxu0 %v1120_v53  ;;  %1396 = vmatpush.msrb.mxu1 %v1184_v54  ;;  %v1450_v54 = vld [vmem:[%s2668_s5 + $0x38] sm:$0xff] }
 0x1c5   :  { %1328 = vmatpush.msra.mxu2 %v1115_v55  ;;  %1351 = vmatpush.msra.mxu3 %v1179_v56  ;;  %v1463_v55 = vld [vmem:[%s2668_s5 + $0xa0] sm:$0xff] }
 0x1c6   :  { %1374 = vmatpush.msrb.mxu0 %v1116_v57  ;;  %1397 = vmatpush.msrb.mxu1 %v1180_v58  ;;  %v1449_v58 = vld [vmem:[%s2668_s5 + $0x30] sm:$0xff] }
 0x1c7   :  { %1329 = vmatpush.msra.mxu2 %v1111_v61  ;;  %1352 = vmatpush.msra.mxu3 %v1175_v62  ;;  %v1462_v61 = vld [vmem:[%s2668_s5 + $0x98] sm:$0xff]  ;;  %v1448_v62 = vld [vmem:[%s2668_s5 + $0x28] sm:$0xff] }
 0x1c8   :  { %1375 = vmatpush.msrb.mxu0 %v1112_v63  ;;  %1398 = vmatpush.msrb.mxu1 %v1176_v0  ;;  %v2355_v52 = vpop.f32.mrf.mxu2  ;;  %v2357_v43 = vpop.f32.mrf.mxu3  ;;  %v1461_v63 = vld [vmem:[%s2668_s5 + $0x90] sm:$0xff]  ;;  %v1447_v0 = vld [vmem:[%s2668_s5 + $0x20] sm:$0xff] }
 0x1c9   :  { %1330 = vmatpush.msra.mxu2 %v1107_v6  ;;  %1353 = vmatpush.msra.mxu3 %v1171_v7  ;;  %v1460_v6 = vld [vmem:[%s2668_s5 + $0x88] sm:$0xff] }
 0x1ca   :  { %1376 = vmatpush.msrb.mxu0 %v1108_v8  ;;  %1399 = vmatpush.msrb.mxu1 %v1172_v9  ;;  %v1446_v9 = vld [vmem:[%s2668_s5 + $0x18] sm:$0xff] }
 0x1cb   :  { %1331 = vmatpush.msra.mxu2 %v1103_v45  ;;  %1354 = vmatpush.msra.mxu3 %v1167_v42  ;;  %v1459_v45 = vld [vmem:[%s2668_s5 + $0x80] sm:$0xff]  ;;  %v1506_v42 = vld [vmem:[%s2668_s5 + $0x1f8] sm:$0xff] }
 0x1cc   :  { %1377 = vmatpush.msrb.mxu0 %v1104_v13  ;;  %1400 = vmatpush.msrb.mxu1 %v1168_v14  ;;  %v1445_v13 = vld [vmem:[%s2668_s5 + $0x10] sm:$0xff] }
 0x1cd   :  { %1332 = vmatpush.msra.mxu2 %v1099_v49  ;;  %1355 = vmatpush.msra.mxu3 %v1163_v15  ;;  %v867_v17 = vpop.f32.mrf.mxu0  ;;  %v890_v18 = vpop.f32.mrf.mxu1  ;;  %v1505_v14 = vld [vmem:[%s2668_s5 + $0x1f0] sm:$0xff] }
 0x1ce   :  { %1378 = vmatpush.msrb.mxu0 %v1100_v16  ;;  %1401 = vmatpush.msrb.mxu1 %v1164_v2  ;;  %v2359_v19 = vadd.f32 %v890_v18, %v867_v17  ;;  %v1444_v16 = vld [vmem:[%s2668_s5 + $0x8] sm:$0xff]  ;;  %v1443_v17 = vld [vmem:[%s2668_s5] sm:$0xff]  ;;  %v1490_v18 = vld [vmem:[%s2668_s5 + $0x178] sm:$0xff] }
 0x1cf   :  { %1333 = vmatmul.f32.vlgmr.msra.gmra.mxu2 %v2317_v1  ;;  %1356 = vmatmul.f32.vlgmr.msra.gmra.mxu3 %v2321_v3  ;;  %v1504_v2 = vld [vmem:[%s2668_s5 + $0x1e8] sm:$0xff] }
 0x1d0   :  { %1379 = vmatmul.f32.vlgmr.msrb.gmra.mxu0 %v2317_v1  ;;  %1402 = vmatmul.f32.vlgmr.msrb.gmra.mxu1 %v2321_v3  ;;  %v1474_v3 = vld [vmem:[%s2668_s5 + $0xf8] sm:$0xff] }
 0x1d1   :  { %1530 = vmatpush.msrb.mxu3 %v1474_v3  ;;  %1576 = vmatpush.msra.mxu1 %v1506_v42  ;;  %v1501_v3 = vld [vmem:[%s2668_s5 + $0x1d0] sm:$0xff] }
 0x1d2   :  { %v821_v20 = vpop.f32.mrf.mxu2  ;;  %v844_v34 = vpop.f32.mrf.mxu3  ;;  %1553 = vmatpush.msra.mxu0 %v1490_v18 }
 0x1d3   :  { %v2365_v35 = vadd.f32 %v844_v34, %v821_v20  ;;  %1531 = vmatpush.msrb.mxu3 %v1473_v4  ;;  %1577 = vmatpush.msra.mxu1 %v1505_v14  ;;  %v1503_v20 = vld [vmem:[%s2668_s5 + $0x1e0] sm:$0xff]  ;;  %v1493_v14 = vld [vmem:[%s2668_s5 + $0x190] sm:$0xff] }
 0x1d4   :  { %v1487_v4 = vld [vmem:[%s2668_s5 + $0x160] sm:$0xff] }
 0x1d5   :  { %1578 = vmatpush.msra.mxu1 %v1504_v2  ;;  %v756_v2 = vadd.f32 %v2357_v43, %v2355_v52  ;;  %v1477_v43 = vld [vmem:[%s2668_s5 + $0x110] sm:$0xff] }
 0x1d7   :  { %1336 = vmatmul.f32.gmra.mxu2 %v2334_v21  ;;  %1359 = vmatmul.f32.gmra.mxu3 %v2337_v22  ;;  %v870_v39 = vpop.f32.mrf.mxu0  ;;  %v893_v40 = vpop.f32.mrf.mxu1 }
 0x1d8   :  { %1382 = vmatmul.f32.gmra.mxu0 %v2334_v21  ;;  %1405 = vmatmul.f32.gmra.mxu1 %v2337_v22  ;;  %v2371_v23 = vadd.f32 %v893_v40, %v870_v39  ;;  %v1472_v21 = vld [vmem:[%s2668_s5 + $0xe8] sm:$0xff]  ;;  %v1458_v22 = vld [vmem:[%s2668_s5 + $0x78] sm:$0xff]  ;;  %v1489_v40 = vld [vmem:[%s2668_s5 + $0x170] sm:$0xff] }
 0x1d9   :  { %1532 = vmatpush.msrb.mxu3 %v1472_v21  ;;  %1507 = vmatpush.msrb.mxu2 %v1458_v22  ;;  %v1500_v21 = vld [vmem:[%s2668_s5 + $0x1c8] sm:$0xff] }
 0x1da   :  { %1579 = vmatpush.msra.mxu1 %v1503_v20  ;;  %1554 = vmatpush.msra.mxu0 %v1489_v40 }
 0x1db   :  { %1533 = vmatpush.msrb.mxu3 %v1471_v5  ;;  %1508 = vmatpush.msrb.mxu2 %v1457_v25  ;;  %v1486_v25 = vld [vmem:[%s2668_s5 + $0x158] sm:$0xff] }
 0x1dc   :  { %v824_v24 = vpop.f32.mrf.mxu2  ;;  %v847_v1 = vpop.f32.mrf.mxu3 }
 0x1dd   :  { %v2373_v10 = vadd.f32 %v847_v1, %v824_v24  ;;  %1534 = vmatpush.msrb.mxu3 %v1470_v26  ;;  %1509 = vmatpush.msrb.mxu2 %v1456_v27  ;;  %v1502_v24 = vld [vmem:[%s2668_s5 + $0x1d8] sm:$0xff]  ;;  %v1488_v1 = vld [vmem:[%s2668_s5 + $0x168] sm:$0xff]  ;;  %v1499_v26 = vld [vmem:[%s2668_s5 + $0x1c0] sm:$0xff] }
 0x1de   :  { %1580 = vmatpush.msra.mxu1 %v1502_v24  ;;  %1555 = vmatpush.msra.mxu0 %v1488_v1  ;;  %v1485_v27 = vld [vmem:[%s2668_s5 + $0x150] sm:$0xff]  ;;  %v1478_v1 = vld [vmem:[%s2668_s5 + $0x118] sm:$0xff] }
 0x1df   :  { %1535 = vmatpush.msrb.mxu3 %v1469_v30  ;;  %1510 = vmatpush.msrb.mxu2 %v1455_v31  ;;  %v799_v30 = vadd.f32 %v2345_v29, %v2343_v28  ;;  %v1498_v31 = vld [vmem:[%s2668_s5 + $0x1b8] sm:$0xff]  ;;  %v1497_v28 = vld [vmem:[%s2668_s5 + $0x1b0] sm:$0xff] }
 0x1e0   :  { %1581 = vmatpush.msra.mxu1 %v1501_v3  ;;  %1556 = vmatpush.msra.mxu0 %v1487_v4  ;;  %v2557_v29 = vld [vmem:[#allocation8] sm:$0xf]  ;;  %v1491_v3 = vld [vmem:[%s2668_s5 + $0x180] sm:$0xff] }
 0x1e1   :  { %1536 = vmatpush.msrb.mxu3 %v1468_v32  ;;  %1511 = vmatpush.msrb.mxu2 %v1454_v33  ;;  %v1484_v32 = vld [vmem:[%s2668_s5 + $0x148] sm:$0xff]  ;;  %v1419_v42 = vperm.slane %v2557_v29, 0 }
 0x1e2   :  { %1582 = vmatpush.msra.mxu1 %v1500_v21  ;;  %1557 = vmatpush.msra.mxu0 %v1486_v25 }
 0x1e3   :  { %1537 = vmatpush.msrb.mxu3 %v1467_v36  ;;  %1512 = vmatpush.msrb.mxu2 %v1453_v37  ;;  %v2432_v48 = vpop.f32.mrf.mxu0  ;;  %v2434_v50 = vpop.f32.mrf.mxu1 }
 0x1e4   :  { %1583 = vmatpush.msra.mxu1 %v1499_v26  ;;  %v960_v33 = vadd.f32 %v2432_v48, %v799_v30  ;;  %1558 = vmatpush.msra.mxu0 %v1485_v27  ;;  %v1476_v27 = vld [vmem:[%s2668_s5 + $0x108] sm:$0xff] }
 0x1e5   :  { %1538 = vmatpush.msrb.mxu3 %v1466_v11  ;;  %1513 = vmatpush.msrb.mxu2 %v1452_v12  ;;  %v1483_v11 = vld [vmem:[%s2668_s5 + $0x140] sm:$0xff]  ;;  %v1496_v12 = vld [vmem:[%s2668_s5 + $0x1a8] sm:$0xff] }
 0x1e6   :  { %1584 = vmatpush.msra.mxu1 %v1498_v31  ;;  %1559 = vmatpush.msra.mxu0 %v1484_v32  ;;  %v983_v48 = vadd.f32 %v2434_v50, %v960_v33  ;;  %v1475_v32 = vld [vmem:[%s2668_s5 + $0x100] sm:$0xff] }
 0x1e7   :  { %1539 = vmatpush.msrb.mxu3 %v1465_v38  ;;  %1514 = vmatpush.msrb.mxu2 %v1451_v41  ;;  %v753_v38 = vadd.f32 %v2349_v46, %v2347_v44  ;;  %v1495_v44 = vld [vmem:[%s2668_s5 + $0x1a0] sm:$0xff]  ;;  %v802_v46 = vadd.f32 %v2353_v60, %v2351_v59 }
 0x1e8   :  { %v2436_v51 = vpop.f32.mrf.mxu2  ;;  %v2438_v53 = vpop.f32.mrf.mxu3  ;;  %1585 = vmatpush.msra.mxu1 %v1497_v28  ;;  %1560 = vmatpush.msra.mxu0 %v1483_v11 }
 0x1e9   :  { %1540 = vmatpush.msrb.mxu3 %v1464_v47  ;;  %1515 = vmatpush.msrb.mxu2 %v1450_v54 }
 0x1ea   :  { %1586 = vmatpush.msra.mxu1 %v1496_v12 }
 0x1eb   :  { %1541 = vmatpush.msrb.mxu3 %v1463_v55  ;;  %1516 = vmatpush.msrb.mxu2 %v1449_v58  ;;  %v1420_v55 = vperm.slane %v2557_v29, 1  ;;  %v914_v58 = vadd.f32 %v2436_v51, %v753_v38  ;;  %v1481_v51 = vld [vmem:[%s2668_s5 + $0x130] sm:$0xff] }
 0x1ec   :  { %1587 = vmatpush.msra.mxu1 %v1495_v44 }
 0x1ed   :  { %v2446_v56 = vpop.f32.mrf.mxu0  ;;  %v2448_v57 = vpop.f32.mrf.mxu1  ;;  %1542 = vmatpush.msrb.mxu3 %v1462_v61  ;;  %1517 = vmatpush.msrb.mxu2 %v1448_v62  ;;  %v1482_v62 = vld [vmem:[%s2668_s5 + $0x138] sm:$0xff] }
 0x1ee   :  { %1561 = vmatpush.msra.mxu0 %v1482_v62  ;;  %v963_v59 = vadd.f32 %v2446_v56, %v802_v46  ;;  %v1492_v56 = vld [vmem:[%s2668_s5 + $0x188] sm:$0xff] }
 0x1ef   :  { %1543 = vmatpush.msrb.mxu3 %v1461_v63  ;;  %1518 = vmatpush.msrb.mxu2 %v1447_v0 }
 0x1f0   :  { %1562 = vmatpush.msra.mxu0 %v1481_v51  ;;  %v986_v40 = vadd.f32 %v2448_v57, %v963_v59 }
 0x1f1   :  { %1544 = vmatpush.msrb.mxu3 %v1460_v6  ;;  %1519 = vmatpush.msrb.mxu2 %v1446_v9  ;;  %v1494_v6 = vld [vmem:[%s2668_s5 + $0x198] sm:$0xff]  ;;  %v937_v9 = vadd.f32 %v2438_v53, %v914_v58  ;;  %v1479_v53 = vld [vmem:[%s2668_s5 + $0x120] sm:$0xff] }
 0x1f2   :  { %v2468_v7 = vpop.f32.mrf.mxu2  ;;  %v2470_v8 = vpop.f32.mrf.mxu3  ;;  %1588 = vmatpush.msra.mxu1 %v1494_v6 }
 0x1f3   :  { %1545 = vmatpush.msrb.mxu3 %v1459_v45  ;;  %1520 = vmatpush.msrb.mxu2 %v1445_v13  ;;  %v1480_v13 = vld [vmem:[%s2668_s5 + $0x128] sm:$0xff]  ;;  %v917_v4 = vadd.f32 %v2468_v7, %v756_v2  ;;  %v1614_v2 = vld [vmem:[%s2669_s6] sm:$0xff] }
 0x1f4   :  { %1563 = vmatpush.msra.mxu0 %v1480_v13  ;;  %1589 = vmatpush.msra.mxu1 %v1493_v14  ;;  %v1618_v14 = vld [vmem:[%s2669_s6 + $0x20] sm:$0xff] }
 0x1f5   :  { %1521 = vmatpush.msrb.mxu2 %v1444_v16  ;;  %v940_v30 = vadd.f32 %v2470_v8, %v917_v4 }
 0x1f6   :  { %1564 = vmatpush.msra.mxu0 %v1479_v53  ;;  %1590 = vmatpush.msra.mxu1 %v1492_v56  ;;  %v1616_v53 = vld [vmem:[%s2669_s6 + $0x10] sm:$0xff]  ;;  %v1615_v56 = vld [vmem:[%s2669_s6 + $0x8] sm:$0xff] }
 0x1f7   :  { %1522 = vmatpush.msrb.mxu2 %v1443_v17 }
 0x1f8   :  { %1565 = vmatpush.msra.mxu0 %v1478_v1  ;;  %1591 = vmatpush.msra.mxu1 %v1491_v3 }
 0x1fa   :  { %1566 = vmatpush.msra.mxu0 %v1477_v43 }
 0x1fc   :  { %1567 = vmatpush.msra.mxu0 %v1476_v27 }
 0x1fe   :  { %1568 = vmatpush.msra.mxu0 %v1475_v32 }
 0x205   :  { %v2487_v49 = vpop.f32.mrf.mxu0  ;;  %v2489_v15 = vpop.f32.mrf.mxu1 }
 0x206   :  { %v1052_v12 = vadd.f32 %v2487_v49, %v2359_v19  ;;  %v1421_v49 = vperm.slane %v2557_v29, 2 }
 0x208   :  { %v1075_v8 = vadd.f32 %v2489_v15, %v1052_v12 }
 0x20a   :  { %v2506_v34 = vpop.f32.mrf.mxu2  ;;  %v2508_v39 = vpop.f32.mrf.mxu3 }
 0x20f   :  { %v2528_v22 = vpop.f32.mrf.mxu0  ;;  %v2530_v5 = vpop.f32.mrf.mxu1 }
 0x210   :  { %v1055_v58 = vadd.f32 %v2528_v22, %v2371_v23 }
 0x212   :  { %v1078_v51 = vadd.f32 %v2530_v5, %v1055_v58 }
 0x214   :  { %v2550_v36 = vpop.f32.mrf.mxu2  ;;  %v2552_v37 = vpop.f32.mrf.mxu3 }
 0x229   :  { %v1288_v41 = vpop.f32.mrf.mxu0  ;;  %v1311_v47 = vpop.f32.mrf.mxu1 }
 0x22a   :  { %v1312_v54 = vadd.f32 %v1311_v47, %v1288_v41 }
 0x22c   :  { %v1410_v61 = vadd.f32 %v1312_v54, %v983_v48  ;;  %v1422_v48 = vperm.slane %v2557_v29, 3  ;;  %v1006_v54 = vadd.f32 %v2506_v34, %v2365_v35  ;;  %v1009_v35 = vadd.f32 %v2550_v36, %v2373_v10  ;;  %v1621_v10 = vld [vmem:[%s2669_s6 + $0x38] sm:$0xff]  ;;  %v1620_v36 = vld [vmem:[%s2669_s6 + $0x30] sm:$0xff] }
 0x22d   :  { %1640 = vmatpush.msra.mxu2 %v1621_v10 }
 0x22e   :  { %v1428_v50 = vadd.f32 %v1420_v55, %v1410_v61  ;;  %v1242_v63 = vpop.f32.mrf.mxu2  ;;  %v1265_v0 = vpop.f32.mrf.mxu3  ;;  %v1029_v46 = vadd.f32 %v2508_v39, %v1006_v54 }
 0x22f   :  { %v1266_v45 = vadd.f32 %v1265_v0, %v1242_v63  ;;  %1641 = vmatpush.msra.mxu2 %v1620_v36 }
 0x230   :  { %v1436_v60 = vmax.f32 %v1428_v50, 0.0 }
 0x231   :  { %v1409_v16 = vadd.f32 %v1266_v45, %v937_v9 }
 0x232   :  { %1546 = vmatmul.f32.vlgmr.msrb.gmra.mxu3 %v1436_v60 }
 0x233   :  { %v1427_v17 = vadd.f32 %v1419_v42, %v1409_v16  ;;  %v1291_v18 = vpop.f32.mrf.mxu0  ;;  %v1314_v20 = vpop.f32.mrf.mxu1  ;;  %v1617_v16 = vld [vmem:[%s2669_s6 + $0x18] sm:$0xff] }
 0x234   :  { %v1315_v24 = vadd.f32 %v1314_v20, %v1291_v18  ;;  %v1656_v18 = vld [vmem:[#allocation11 + $0x18] sm:$0xff]  ;;  %v1655_v20 = vld [vmem:[#allocation11 + $0x10] sm:$0xff] }
 0x235   :  { %v1435_v21 = vmax.f32 %v1427_v17, 0.0  ;;  %1677 = vmatpush.msra.mxu3 %v1656_v18 }
 0x236   :  { %v1414_v52 = vadd.f32 %v1315_v24, %v986_v40  ;;  %v1654_v24 = vld [vmem:[#allocation11 + $0x8] sm:$0xff] }
 0x237   :  { %1523 = vmatmul.f32.vlgmr.msrb.gmra.mxu2 %v1435_v21  ;;  %1678 = vmatpush.msra.mxu3 %v1655_v20 }
 0x238   :  { %v1245_v57 = vpop.f32.mrf.mxu2  ;;  %v1268_v25 = vpop.f32.mrf.mxu3  ;;  %v1432_v26 = vadd.f32 %v1420_v55, %v1414_v52 }
 0x239   :  { %v1269_v7 = vadd.f32 %v1268_v25, %v1245_v57  ;;  %1679 = vmatpush.msra.mxu3 %v1654_v24 }
 0x23a   :  { %v1440_v31 = vmax.f32 %v1432_v26, 0.0 }
 0x23b   :  { %v1413_v33 = vadd.f32 %v1269_v7, %v940_v30 }
 0x23c   :  { %1549 = vmatmul.f32.gmra.mxu3 %v1440_v31 }
 0x23d   :  { %v1431_v28 = vadd.f32 %v1419_v42, %v1413_v33  ;;  %v1032_v42 = vadd.f32 %v2552_v37, %v1009_v35  ;;  %v1619_v37 = vld [vmem:[%s2669_s6 + $0x28] sm:$0xff]  ;;  %s2079_s6 = smov [#allocation17]  }
 0x23e   :  { %1642 = vmatpush.msra.mxu2 %v1619_v37  ;;  %s1748_s29 = sshll.u32 %s2079_s6, 4  ;;  %s1749_s29 = int_to_ptr.vmem [resolvable:$true] %s1748_s29 }
 0x23f   :  { %v1439_v11 = vmax.f32 %v1431_v28, 0.0 }
 0x240   :  { %1643 = vmatpush.msra.mxu2 %v1618_v14 }
 0x241   :  { %1526 = vmatmul.f32.gmra.mxu2 %v1439_v11 }
 0x242   :  { %1644 = vmatpush.msra.mxu2 %v1617_v16 }
 0x244   :  { %1645 = vmatpush.msra.mxu2 %v1616_v53 }
 0x246   :  { %1646 = vmatpush.msra.mxu2 %v1615_v56 }
 0x248   :  { %1647 = vmatpush.msra.mxu2 %v1614_v2 }
 0x24d   :  { %v1380_v38 = vpop.f32.mrf.mxu0  ;;  %v1403_v41 = vpop.f32.mrf.mxu1 }
 0x24e   :  { %v1404_v47 = vadd.f32 %v1403_v41, %v1380_v38 }
 0x250   :  { %v1412_v55 = vadd.f32 %v1404_v47, %v1075_v8 }
 0x252   :  { %v1430_v61 = vadd.f32 %v1422_v48, %v1412_v55  ;;  %v1334_v62 = vpop.f32.mrf.mxu2  ;;  %v1357_v44 = vpop.f32.mrf.mxu3 }
 0x253   :  { %v1358_v19 = vadd.f32 %v1357_v44, %v1334_v62  ;;  %v1653_v62 = vld [vmem:[#allocation11] sm:$0xff] }
 0x254   :  { %v1438_v50 = vmax.f32 %v1430_v61, 0.0  ;;  %1680 = vmatpush.msra.mxu3 %v1653_v62  ;;  %v1689_v44 = vld [vmem:[#allocation14 + $0x18] sm:$0xff] }
 0x255   :  { %v1411_v15 = vadd.f32 %v1358_v19, %v1029_v46  ;;  %v1383_v63 = vpop.f32.mrf.mxu0  ;;  %v1406_v0 = vpop.f32.mrf.mxu1  ;;  %v1688_v46 = vld [vmem:[#allocation14 + $0x10] sm:$0xff]  ;;  %1709 = vmatpush.msrb.mxu2 %v1689_v44  ;;  %v1804_v19 = vld [vmem:[#allocation10] ss:$0 sm:$0xff] }
 0x256   :  { %v1407_v6 = vadd.f32 %v1406_v0, %v1383_v63  ;;  %1592 = vmatmul.f32.vlgmr.msra.gmra.mxu1 %v1438_v50  ;;  %v1687_v63 = vld [vmem:[#allocation14 + $0x8] sm:$0xff]  ;;  %v1686_v0 = vld [vmem:[#allocation14] sm:$0xff] }
 0x257   :  { %v1429_v23 = vadd.f32 %v1421_v49, %v1411_v15  ;;  %1710 = vmatpush.msrb.mxu2 %v1688_v46 }
 0x258   :  { %v1416_v34 = vadd.f32 %v1407_v6, %v1078_v51  ;;  %v1805_v51 = vld [vmem:[#allocation13] ss:$0 sm:$0xff] }
 0x259   :  { %v1437_v22 = vmax.f32 %v1429_v23, 0.0  ;;  %1711 = vmatpush.msrb.mxu2 %v1687_v63 }
 0x25a   :  { %v1337_v9 = vpop.f32.mrf.mxu2  ;;  %v1360_v45 = vpop.f32.mrf.mxu3  ;;  %v1434_v39 = vadd.f32 %v1422_v48, %v1416_v34  ;;  %v1806_v34 = vld [vmem:[#allocation16] ss:$0 sm:$0xff] }
 0x25b   :  { %v1361_v29 = vadd.f32 %v1360_v45, %v1337_v9  ;;  %1569 = vmatmul.f32.vlgmr.msra.gmra.mxu0 %v1437_v22  ;;  %1712 = vmatpush.msrb.mxu2 %v1686_v0 }
 0x25c   :  { %v1442_v59 = vmax.f32 %v1434_v39, 0.0 }
 0x25d   :  { %v1415_v60 = vadd.f32 %v1361_v29, %v1032_v42 }
 0x25e   :  { %1595 = vmatmul.f32.gmra.mxu1 %v1442_v59 }
 0x25f   :  { %v1433_v13 = vadd.f32 %v1421_v49, %v1415_v60 }
 0x261   :  { %v1441_v5 = vmax.f32 %v1433_v13, 0.0 }
 0x263   :  { %1572 = vmatmul.f32.gmra.mxu0 %v1441_v5 }
 0x2b5   :  { %v1547_v40 = vpop.f32.mrf.mxu3 }
 0x2ba   :  { %v1524_v17 = vpop.f32.mrf.mxu2 }
 0x2bb   :  { %v1548_v1 = vadd.f32 %v1547_v40, %v1524_v17 }
 0x2bf   :  { %v1550_v25 = vpop.f32.mrf.mxu3 }
 0x2c4   :  { %v1527_v43 = vpop.f32.mrf.mxu2 }
 0x2c5   :  { %v1551_v27 = vadd.f32 %v1550_v25, %v1527_v43 }
 0x2d3   :  { %v1593_v3 = vpop.f32.mrf.mxu1 }
 0x2d8   :  { %v1570_v4 = vpop.f32.mrf.mxu0 }
 0x2d9   :  { %v1571_v21 = vadd.f32 %v1570_v4, %v1548_v1 }
 0x2db   :  { %v1594_v52 = vadd.f32 %v1593_v3, %v1571_v21  ;;  %v1596_v32 = vpop.f32.mrf.mxu1 }
 0x2dd   :  { %v1600_v57 = vsel %vm1599_vm13, %v1594_v52, 0.0 }
 0x2de   :  { %v1601_v26 = vrot.slane %v1600_v57, 4 }
 0x2e0   :  { %v1602_v30 = vadd.f32 %v1601_v26, %v1600_v57  ;;  %v1573_v7 = vpop.f32.mrf.mxu0 }
 0x2e1   :  { %v1574_v31 = vadd.f32 %v1573_v7, %v1551_v27 }
 0x2e2   :  { %v1603_v28 = vrot.slane %v1602_v30, 2 }
 0x2e3   :  { %v1597_v33 = vadd.f32 %v1596_v32, %v1574_v31 }
 0x2e4   :  { %v1604_v38 = vadd.f32 %v1603_v28, %v1602_v30 }
 0x2e5   :  { %v1607_v11 = vsel %vm1599_vm13, %v1597_v33, 0.0 }
 0x2e6   :  { %v1608_v12 = vrot.slane %v1607_v11, 4  ;;  %v1605_v47 = vrot.slane %v1604_v38, 1 }
 0x2e8   :  { %v1609_v41 = vadd.f32 %v1608_v12, %v1607_v11  ;;  %v1606_v55 = vadd.f32 %v1605_v47, %v1604_v38 }
 0x2ea   :  { %v1610_v8 = vrot.slane %v1609_v41, 2 }
 0x2ec   :  { %v1611_v48 = vadd.f32 %v1610_v8, %v1609_v41 }
 0x2ee   :  { %v1612_v54 = vrot.slane %v1611_v48, 1 }
 0x2f0   :  { %v1613_v58 = vadd.f32 %v1612_v54, %v1611_v48 }
 0x2f2   :  { %v1629_v61 = vsel %vm1628_vm14, %v1613_v58, %v1606_v55 }
 0x2f3   :  { %1784 = vmatmul.msk.f32.vlgmr.msra.gmra.mxu2 %vm1599_vm13, %v1629_v61 }
 0x376   :  { %v1649_v49 = vpop.f32.mrf.mxu2 }
 0x377   :  { %v1650_v50 = vadd.f32 %v1804_v19, %v1649_v49 }
 0x379   :  { %v1652_v15 = vmax.f32 %v1650_v50, 0.0 }
 0x37b   :  { %1785 = vmatmul.msk.f32.vlgmr.msra.gmra.mxu3 %vm1661_vm15, %v1652_v15 }
 0x3fe   :  { %v1682_v6 = vpop.f32.mrf.mxu3 }
 0x3ff   :  { %v1683_v35 = vadd.f32 %v1805_v51, %v1682_v6 }
 0x401   :  { %v1685_v23 = vmax.f32 %v1683_v35, 0.0 }
 0x403   :  { %1786 = vmatmul.msk.f32.vlgmr.msrb.gmra.mxu2 %vm1661_vm15, %v1685_v23 }
 0x486   :  { %v1714_v22 = vpop.f32.mrf.mxu2 }
 0x487   :  { %v1715_v9 = vadd.f32 %v1806_v34, %v1714_v22 }
 0x489   :  { %v1718_v45 = vsel %vm1717_vm0, %v1715_v9, -inf }
 0x48a   :  { %1719 = vmax.xlane.f32.xlu2 %v1718_v45 }
 0x4fd   :  { %v1720_v39 = vpop.xlane.xlu2 %1719 }
 0x4fe   :  { %v1721_v42 = vsub.f32 %v1715_v9, %v1720_v39 }
 0x500   :  { %v1722_v29 = vmul.f32 1.442695, %v1721_v42 }
 0x502   :  { %1807 = vpow2.f32 %v1722_v29 }
 0x508   :  { %v1808_v59 = vpop.eup %1807 }
 0x509   :  { %v1724_v60 = vsel %vm1717_vm0, %v1808_v59, 0.0 }
 0x50a   :  { %1725 = vadd.xlane.f32.xlu2 %v1724_v60 }
 0x57d   :  { %v1726_v13 = vpop.xlane.xlu2 %1725 }
 0x57e   :  { %1809 = vrcp.f32 %v1726_v13  ;;  %v1738_v37 = vand.u32 2147483648, %v1726_v13  ;;  %v1736_v16 = vand.u32 2147483647, %v1726_v13  ;;  %vm1732_vm2 = vweird.f32 %v1726_v13 }
 0x580   :  { %v1739_v56 = vor.u32 1.1754944e-38, %v1738_v37  ;;  %vm1737_vm4 = vcmp.eq.f32.partialorder %v1736_v16, 8.507059e+37 }
 0x584   :  { %v1810_v5 = vpop.eup %1809 }
 0x585   :  { %v1728_v10 = vmul.f32 %v1810_v5, %v1726_v13  ;;  %vm1733_vm1 = vweird.f32 %v1810_v5 }
 0x586   :  { %vm1734_vm3 = vmor %vm1732_vm2, %vm1733_vm1 }
 0x587   :  { %v1729_v36 = vsub.f32 1.0, %v1728_v10 }
 0x589   :  { %v1730_v14 = vmul.f32 %v1810_v5, %v1729_v36 }
 0x58b   :  { %v1731_v53 = vadd.f32 %v1810_v5, %v1730_v14 }
 0x58d   :  { %v1735_v2 = vsel %vm1734_vm3, %v1810_v5, %v1731_v53 }
 0x58e   :  { %v1740_v17 = vsel %vm1737_vm4, %v1739_v56, %v1735_v2 }
 0x58f   :  { %v1741_v18 = vmul.f32 %v1808_v59, %v1740_v17 }
 0x591   :  { %1742 = vst [vmem:[#allocation17] sm:$0x3] %v1741_v18 }
 0x592   :  { %1753 = dma.vmem_to_hbm [thread:$0]  %s1749_s29, 32, %s1751_s14, [#allocation4]  }
 0x593   :  { %2061 = dma.done.wait [#allocation4], 32  }
 0x594   :  { %2062 = vsyncadd [#allocation4], 4294967264 }
 0x595   :  { %1758 = vsyncpa [#allocation3], 1 }
 0x596   :  { %1759 = vsyncpa [#allocation6], 1 }
 0x597   :  { %1760 = vsyncpa [#allocation9], 1 }
 0x598   :  { %1761 = vsyncpa [#allocation12], 1 }
 0x599   :  { %1762 = vsyncpa [#allocation15], 1 }
 0x59a   :  { %1763 = vsyncpa [#allocation4], 1 }

</bundles_post_ra>
